<compile_context>
chip_gen: v6e
topology: v6e:2x2x1
jax: 0.10.0
libtpu: 0.0.40
codegen_flags: <defaults>
</compile_context>

<pallas_src>
import jax
import jax.numpy as jnp
from jax import lax
from jax.experimental import pallas as pl
from jax.experimental.pallas import tpu as pltpu


def _rnn_caption_kernel(emb_ref, wih_ref, whh_ref, blstm_ref, h0_ref, c0_ref,
                        wdec_ref, bdec_ref,
                        dec_ref, hN_ref, cN_ref,
                        gx_scr, hs_scr, hsb_scr):
    """Fused LSTM recurrence + V-tiled decoder Linear.

    Grid: (V // tv,) "arbitrary". The recurrence runs once (grid step 0) and its
    results persist in scratch; every grid step emits one lane-dense logits tile.

    emb_ref  : (S*B, ninp) bf16   all timestep embeddings, rows ordered (t, b)
    wih_ref  : (ninp, 4H)  bf16   W_ih^T, gate-column order [i, f, o, g]
    whh_ref  : (H,    4H)  bf16   W_hh^T, same gate order
    blstm_ref: (1,    4H)  f32    b_ih + b_hh, same gate order
    h0/c0    : (B, H)      f32    initial hidden / cell state
    wdec_ref : (H, tv)     bf16   decoder weight^T, current V tile
    bdec_ref : (1, tv)     f32    decoder bias, current V tile
    dec_ref  : (S*B, tv)   f32    logits tile, rows ordered (t, b)
    hN/cN    : (B, H)      f32    final hidden / cell state (resident output)
    gx_scr   : (S*B, 4H)   f32    hoisted input projection + bias
    hs_scr   : (S*B, H)    f32    per-step hidden states
    hsb_scr  : (S*B, H)    bf16   decoder-dtype copy of hs_scr (cast once)
    """
    B, H = h0_ref.shape
    SB = emb_ref.shape[0]
    S = SB // B

    @pl.when(pl.program_id(0) == 0)
    def _recurrence():
        # Hoisted x-projection + folded bias: one big MXU matmul, off the
        # serial critical path of the recurrence.
        gx_scr[...] = (
            jnp.dot(emb_ref[...], wih_ref[...],
                    preferred_element_type=jnp.float32)
            + blstm_ref[...])

        def step(t, carry):
            h_prev, c_prev = carry                                   # f32 (B, H)
            row = pl.multiple_of(t * B, B)
            # whh is read from VMEM inside the step (not a long-lived value).
            gates = gx_scr[pl.ds(row, B), :] + jnp.dot(
                h_prev.astype(jnp.bfloat16), whh_ref[...],
                preferred_element_type=jnp.float32)                  # f32 (B, 4H)
            # gate order [i, f, o, g]: one contiguous sigmoid slab + one tanh.
            ifo = jax.nn.sigmoid(gates[:, :3 * H])
            g_g = jnp.tanh(gates[:, 3 * H:])
            i_g = ifo[:, 0 * H:1 * H]
            f_g = ifo[:, 1 * H:2 * H]
            o_g = ifo[:, 2 * H:3 * H]
            c_new = f_g * c_prev + i_g * g_g
            h_new = o_g * jnp.tanh(c_new)
            hs_scr[pl.ds(row, B), :] = h_new
            return h_new, c_new

        unroll = True if S <= 16 else 4
        h_fin, c_fin = lax.fori_loop(0, S, step, (h0_ref[...], c0_ref[...]),
                                     unroll=unroll)
        hN_ref[...] = h_fin
        cN_ref[...] = c_fin
        # One-shot cast of all hidden states to the decoder's matmul dtype.
        hsb_scr[...] = hs_scr[...].astype(jnp.bfloat16)

    # Decoder Linear: one lane-dense V tile per grid step; W_dec^T / bias /
    # logits tiles are streamed (double-buffered) by the BlockSpec pipeline.
    dec_ref[...] = (jnp.dot(hsb_scr[...], wdec_ref[...],
                            preferred_element_type=jnp.float32)
                    + bdec_ref[...])


def _reorder_gates_ifog(w):
    """PyTorch LSTM gate blocks [i, f, g, o] -> [i, f, o, g] along leading 4H axis."""
    i, f, g, o = jnp.split(w, 4, axis=0)
    return jnp.concatenate([i, f, o, g], axis=0)


@jax.jit
def rnn_caption_forward(tokens, hidden, params):
    """Forward pass of RNN_caption (LSTM, nlayers=1, eval-mode dropout)."""
    enc_w = params["enc_w"]                     # (V, ninp)
    wih = params["wih"]                         # (4H, ninp)  PyTorch order i,f,g,o
    whh = params["whh"]                         # (4H, H)
    b_lstm = params["b_ih"] + params["b_hh"]    # (4H,)
    wdec = params["dec_w"]                      # (V, H)
    bdec = params["dec_b"]                      # (V,)

    h0, c0 = hidden                             # each (1, B, H)
    S, B = tokens.shape
    V, ninp = enc_w.shape
    H = whh.shape[1]

    # Perf guards (avoid silent masked partial stores / lane-sparse tiles).
    assert B % 8 == 0, "batch must be a multiple of 8 (sublane alignment)"
    assert H % 128 == 0 and ninp % 128 == 0, "nhid/ninp must be multiples of 128"
    assert V % 128 == 0, "vocab must be a multiple of 128 (pad if needed)"

    # Decoder V tile: lane-dense (multiple of 128), streamed over a grid axis.
    # TODO(synk): sweep tv (256-512) for real vocab sizes.
    tv = 128
    assert V % tv == 0
    n_v_tiles = V // tv

    # ---- glue: embedding gather (encoder) + eval-mode dropout (identity) ----
    emb = enc_w[tokens].astype(jnp.bfloat16).reshape(S * B, ninp)   # rows = (t, b)

    wih_t = _reorder_gates_ifog(wih).T.astype(jnp.bfloat16)     # (ninp, 4H)
    whh_t = _reorder_gates_ifog(whh).T.astype(jnp.bfloat16)     # (H, 4H)
    b2 = _reorder_gates_ifog(b_lstm).reshape(1, 4 * H)          # (1, 4H) f32
    wdec_t = wdec.T.astype(jnp.bfloat16)                        # (H, V)
    bdec2 = bdec.reshape(1, V)                                  # (1, V)  f32
    h0_2d = h0[0]                                               # (B, H)
    c0_2d = c0[0]                                               # (B, H)

    # Advisory cost hint for XLA scheduling around the custom call.
    flops = (2 * S * B * ninp * 4 * H          # hoisted x-projection
             + 2 * S * B * H * 4 * H           # recurrent h-projection
             + 2 * S * B * H * V)              # decoder
    transcendentals = 5 * S * B * H            # 3 sigmoid + 2 tanh per (b, h)
    bytes_accessed = (S * B * ninp * 2 + ninp * 4 * H * 2 + H * 4 * H * 2
                      + 4 * H * 4 + H * V * 2 + V * 4
                      + 4 * B * H * 4 + S * B * V * 4)
    cost = pl.CostEstimate(flops=flops, transcendentals=transcendentals,
                           bytes_accessed=bytes_accessed)

    # Explicit scoped-VMEM limit with headroom (resident + double-buffered
    # streamed tiles + scratch), clamped to stay safe on 64 MiB (v7x) parts.
    resident_bytes = (S * B * ninp * 2 + ninp * 4 * H * 2 + H * 4 * H * 2
                      + 4 * H * 4 + 2 * B * H * 4 + 2 * B * H * 4)
    streamed_bytes = 2 * (H * tv * 2 + tv * 4 + S * B * tv * 4)
    scratch_bytes = S * B * 4 * H * 4 + S * B * H * 4 + S * B * H * 2
    vmem_limit = int(min(max(2 * (resident_bytes + streamed_bytes + scratch_bytes),
                             16 * 1024 * 1024),
                         64 * 1024 * 1024))

    decoded_flat, hN, cN = pl.pallas_call(
        _rnn_caption_kernel,
        out_shape=(
            jax.ShapeDtypeStruct((S * B, V), jnp.float32),
            jax.ShapeDtypeStruct((B, H), jnp.float32),
            jax.ShapeDtypeStruct((B, H), jnp.float32),
        ),
        grid_spec=pltpu.PrefetchScalarGridSpec(
            num_scalar_prefetch=0,
            grid=(n_v_tiles,),                                     # decoder V tiles
            in_specs=[
                pl.BlockSpec((S * B, ninp), lambda v: (0, 0)),     # emb (resident)
                pl.BlockSpec((ninp, 4 * H), lambda v: (0, 0)),     # W_ih^T
                pl.BlockSpec((H, 4 * H), lambda v: (0, 0)),        # W_hh^T
                pl.BlockSpec((1, 4 * H), lambda v: (0, 0)),        # lstm bias
                pl.BlockSpec((B, H), lambda v: (0, 0)),            # h0
                pl.BlockSpec((B, H), lambda v: (0, 0)),            # c0
                pl.BlockSpec((H, tv), lambda v: (0, v)),           # W_dec^T tile
                pl.BlockSpec((1, tv), lambda v: (0, v)),           # dec bias tile
            ],
            out_specs=[
                pl.BlockSpec((S * B, tv), lambda v: (0, v)),       # logits tile
                pl.BlockSpec((B, H), lambda v: (0, 0)),            # h_N (resident)
                pl.BlockSpec((B, H), lambda v: (0, 0)),            # c_N (resident)
            ],
            scratch_shapes=[
                pltpu.VMEM((S * B, 4 * H), jnp.float32),           # gates_x
                pltpu.VMEM((S * B, H), jnp.float32),               # all h_t (f32)
                pltpu.VMEM((S * B, H), jnp.bfloat16),              # all h_t (bf16)
            ],
        ),
        compiler_params=pltpu.CompilerParams(
            dimension_semantics=("arbitrary",),                    # scratch carried
            vmem_limit_bytes=vmem_limit,
        ),
        cost_estimate=cost,
    )(emb, wih_t, whh_t, b2, h0_2d, c0_2d, wdec_t, bdec2)

    decoded = decoded_flat.reshape(S, B, V)
    return decoded, (hN[None], cN[None])


def _reference_forward(tokens, hidden, params):
    """Pure-JAX f32 reference for a sanity check."""
    enc_w = params["enc_w"]
    wih, whh = params["wih"], params["whh"]
    b = params["b_ih"] + params["b_hh"]
    wdec, bdec = params["dec_w"], params["dec_b"]
    h, c = hidden[0][0], hidden[1][0]
    H = whh.shape[1]
    emb = enc_w[tokens]

    def step(carry, x):
        h, c = carry
        g = x @ wih.T + h @ whh.T + b
        i = jax.nn.sigmoid(g[:, 0 * H:1 * H])
        f = jax.nn.sigmoid(g[:, 1 * H:2 * H])
        gg = jnp.tanh(g[:, 2 * H:3 * H])
        o = jax.nn.sigmoid(g[:, 3 * H:4 * H])
        c = f * c + i * gg
        h = o * jnp.tanh(c)
        return (h, c), h

    (hN, cN), outs = jax.lax.scan(step, (h, c), emb)
    decoded = outs @ wdec.T + bdec
    return decoded, (hN[None], cN[None])


def init_params(key, ntoken, ninp, nhid):
    """Deterministic parameter init mirroring the PyTorch module's __init__."""
    k = jax.random.split(key, 6)
    initrange = 0.1
    stdv = 1.0 / jnp.sqrt(nhid)
    return {
        "enc_w": jax.random.uniform(k[0], (ntoken, ninp), jnp.float32,
                                    -initrange, initrange),
        "wih": jax.random.uniform(k[1], (4 * nhid, ninp), jnp.float32, -stdv, stdv),
        "whh": jax.random.uniform(k[2], (4 * nhid, nhid), jnp.float32, -stdv, stdv),
        "b_ih": jax.random.uniform(k[3], (4 * nhid,), jnp.float32, -stdv, stdv),
        "b_hh": jax.random.uniform(k[4], (4 * nhid,), jnp.float32, -stdv, stdv),
        "dec_w": jax.random.uniform(k[5], (ntoken, nhid), jnp.float32,
                                    -initrange, initrange),
        "dec_b": jnp.zeros((ntoken,), jnp.float32),
    }


if __name__ == "__main__":
    ntoken, ninp, nhid = 256, 128, 128
    seq_len, batch = 6, 8

    key = jax.random.PRNGKey(0)
    kp, kt, kh, kc = jax.random.split(key, 4)

    params = init_params(kp, ntoken, ninp, nhid)
    tokens = jax.random.randint(kt, (seq_len, batch), 0, ntoken, dtype=jnp.int32)
    h0 = jax.random.normal(kh, (1, batch, nhid), jnp.float32) * 0.1
    c0 = jax.random.normal(kc, (1, batch, nhid), jnp.float32) * 0.1

    decoded, (hN, cN) = rnn_caption_forward(tokens, (h0, c0), params)
    jax.block_until_ready(decoded)
    jax.block_until_ready(hN)
    jax.block_until_ready(cN)

    # sanity check against a pure-JAX f32 reference (kernel uses bf16 matmul operands)
    dec_ref, (h_ref, c_ref) = _reference_forward(tokens, (h0, c0), params)
    assert decoded.shape == (seq_len, batch, ntoken)
    assert hN.shape == (1, batch, nhid) and cN.shape == (1, batch, nhid)
    assert jnp.allclose(decoded, dec_ref, atol=2e-2, rtol=2e-2)
    assert jnp.allclose(hN, h_ref, atol=2e-2, rtol=2e-2)
    assert jnp.allclose(cN, c_ref, atol=2e-2, rtol=2e-2)

    print("KERNEL_OK")
</pallas_src>

<mosaic_0001>
module attributes {stable_mosaic.version = 11 : i64} {
  func.func @_rnn_caption_kernel(%arg0: i32, %arg1: memref<48x128xbf16, #tpu.memory_space<vmem>>, %arg2: memref<128x512xbf16, #tpu.memory_space<vmem>>, %arg3: memref<128x512xbf16, #tpu.memory_space<vmem>>, %arg4: memref<1x512xf32, #tpu.memory_space<vmem>>, %arg5: memref<8x128xf32, #tpu.memory_space<vmem>>, %arg6: memref<8x128xf32, #tpu.memory_space<vmem>>, %arg7: memref<128x128xbf16, #tpu.memory_space<vmem>>, %arg8: memref<1x128xf32, #tpu.memory_space<vmem>>, %arg9: memref<48x128xf32, #tpu.memory_space<vmem>>, %arg10: memref<8x128xf32, #tpu.memory_space<vmem>>, %arg11: memref<8x128xf32, #tpu.memory_space<vmem>>, %arg12: memref<48x512xf32, #tpu.memory_space<vmem>>, %arg13: memref<48x128xf32, #tpu.memory_space<vmem>>, %arg14: memref<48x128xbf16, #tpu.memory_space<vmem>>) attributes {dimension_semantics = [#tpu.dimension_semantics<arbitrary>], iteration_bounds = array<i64: 2>, scalar_prefetch = 0 : i64, scratch_operands = 3 : i64, tpu.core_type = #tpu.core_type<tc>, window_params = [{pipeline_mode = #tpu.pipeline_mode<synchronous>, transform_indices = @transform_0, window_bounds = array<i64: 48, 128>}, {pipeline_mode = #tpu.pipeline_mode<synchronous>, transform_indices = @transform_1, window_bounds = array<i64: 128, 512>}, {pipeline_mode = #tpu.pipeline_mode<synchronous>, transform_indices = @transform_2, window_bounds = array<i64: 128, 512>}, {pipeline_mode = #tpu.pipeline_mode<synchronous>, transform_indices = @transform_3, window_bounds = array<i64: 1, 512>}, {pipeline_mode = #tpu.pipeline_mode<synchronous>, transform_indices = @transform_4, window_bounds = array<i64: 8, 128>}, {pipeline_mode = #tpu.pipeline_mode<synchronous>, transform_indices = @transform_5, window_bounds = array<i64: 8, 128>}, {transform_indices = @transform_6, window_bounds = array<i64: 128, 128>}, {transform_indices = @transform_7, window_bounds = array<i64: 1, 128>}, {transform_indices = @transform_8, window_bounds = array<i64: 48, 128>}, {pipeline_mode = #tpu.pipeline_mode<synchronous>, transform_indices = @transform_9, window_bounds = array<i64: 8, 128>}, {pipeline_mode = #tpu.pipeline_mode<synchronous>, transform_indices = @transform_10, window_bounds = array<i64: 8, 128>}]} {
    %c0_i32 = arith.constant 0 : i32
    %0 = arith.cmpi eq, %arg0, %c0_i32 : i32
    %1 = arith.extui %0 : i1 to i32
    %c0_i32_0 = arith.constant 0 : i32
    %2 = arith.cmpi ne, %1, %c0_i32_0 : i32
    scf.if %2 {
      %c0_8 = arith.constant 0 : index
      %c0_9 = arith.constant 0 : index
      %10 = vector.load %arg1[%c0_8, %c0_9] : memref<48x128xbf16, #tpu.memory_space<vmem>>, vector<48x128xbf16>
      %c0_10 = arith.constant 0 : index
      %c0_11 = arith.constant 0 : index
      %11 = vector.load %arg2[%c0_10, %c0_11] : memref<128x512xbf16, #tpu.memory_space<vmem>>, vector<128x512xbf16>
      %cst_12 = arith.constant dense<0.000000e+00> : vector<48x512xf32>
      %12 = tpu.matmul %10, %11, %cst_12 {dimension_numbers = #tpu.dot_dimension_numbers<[1], [0], [0], [1], [0, 0, 1, 1], [], []>} : vector<48x128xbf16>, vector<128x512xbf16>, vector<48x512xf32> -> vector<48x512xf32>
      %c0_13 = arith.constant 0 : index
      %c0_14 = arith.constant 0 : index
      %13 = vector.load %arg4[%c0_13, %c0_14] : memref<1x512xf32, #tpu.memory_space<vmem>>, vector<1x512xf32>
      %14 = vector.broadcast %13 : vector<1x512xf32> to vector<48x512xf32>
      %15 = arith.addf %12, %14 : vector<48x512xf32>
      %c0_15 = arith.constant 0 : index
      %c0_16 = arith.constant 0 : index
      %16 = vector.load %arg12[%c0_15, %c0_16] : memref<48x512xf32, #tpu.memory_space<vmem>>, vector<48x512xf32>
      tpu.vector_store %arg12[%c0_15, %c0_16], %15 {strides = array<i32>} : memref<48x512xf32, #tpu.memory_space<vmem>>, vector<48x512xf32>,
      %c0_17 = arith.constant 0 : index
      %c0_18 = arith.constant 0 : index
      %17 = vector.load %arg5[%c0_17, %c0_18] : memref<8x128xf32, #tpu.memory_space<vmem>>, vector<8x128xf32>
      %c0_19 = arith.constant 0 : index
      %c0_20 = arith.constant 0 : index
      %18 = vector.load %arg6[%c0_19, %c0_20] : memref<8x128xf32, #tpu.memory_space<vmem>>, vector<8x128xf32>
      %c0_i32_21 = arith.constant 0 : i32
      %c8_i32 = arith.constant 8 : i32
      %19 = arith.muli %c0_i32_21, %c8_i32 : i32
      %20 = tpu.assume_multiple %19, 8 : i32
      %21 = arith.index_cast %20 : i32 to index
      %c0_22 = arith.constant 0 : index
      %22 = vector.load %arg12[%21, %c0_22] : memref<48x512xf32, #tpu.memory_space<vmem>>, vector<8x512xf32>
      %23 = arith.truncf %17 : vector<8x128xf32> to vector<8x128xbf16>
      %c0_23 = arith.constant 0 : index
      %c0_24 = arith.constant 0 : index
      %24 = vector.load %arg3[%c0_23, %c0_24] : memref<128x512xbf16, #tpu.memory_space<vmem>>, vector<128x512xbf16>
      %cst_25 = arith.constant dense<0.000000e+00> : vector<8x512xf32>
      %25 = tpu.matmul %23, %24, %cst_25 {dimension_numbers = #tpu.dot_dimension_numbers<[1], [0], [0], [1], [0, 0, 1, 1], [], []>} : vector<8x128xbf16>, vector<128x512xbf16>, vector<8x512xf32> -> vector<8x512xf32>
      %26 = arith.addf %22, %25 : vector<8x512xf32>
      %27 = vector.extract_strided_slice %26 {offsets = [0, 0], sizes = [8, 384], strides = [1, 1]} : vector<8x512xf32> to vector<8x384xf32>
      %28 = arith.negf %27 : vector<8x384xf32>
      %29 = math.exp %28 : vector<8x384xf32>
      %cst_26 = arith.constant 1.000000e+00 : f32
      %30 = vector.broadcast %cst_26 : f32 to vector<8x384xf32>
      %31 = arith.addf %30, %29 : vector<8x384xf32>
      %32 = arith.divf %30, %31 : vector<8x384xf32>
      %33 = vector.extract_strided_slice %26 {offsets = [0, 384], sizes = [8, 128], strides = [1, 1]} : vector<8x512xf32> to vector<8x128xf32>
      %34 = math.tanh %33 : vector<8x128xf32>
      %35 = vector.extract_strided_slice %32 {offsets = [0, 0], sizes = [8, 128], strides = [1, 1]} : vector<8x384xf32> to vector<8x128xf32>
      %36 = vector.extract_strided_slice %32 {offsets = [0, 128], sizes = [8, 128], strides = [1, 1]} : vector<8x384xf32> to vector<8x128xf32>
      %37 = vector.extract_strided_slice %32 {offsets = [0, 256], sizes = [8, 128], strides = [1, 1]} : vector<8x384xf32> to vector<8x128xf32>
      %38 = arith.mulf %36, %18 : vector<8x128xf32>
      %39 = arith.mulf %35, %34 : vector<8x128xf32>
      %40 = arith.addf %38, %39 : vector<8x128xf32>
      %41 = math.tanh %40 : vector<8x128xf32>
      %42 = arith.mulf %37, %41 : vector<8x128xf32>
      %43 = arith.index_cast %20 : i32 to index
      %c0_27 = arith.constant 0 : index
      %44 = vector.load %arg13[%43, %c0_27] : memref<48x128xf32, #tpu.memory_space<vmem>>, vector<8x128xf32>
      tpu.vector_store %arg13[%43, %c0_27], %42 {strides = array<i32>} : memref<48x128xf32, #tpu.memory_space<vmem>>, vector<8x128xf32>,
      %c1_i32 = arith.constant 1 : i32
      %c8_i32_28 = arith.constant 8 : i32
      %45 = arith.muli %c1_i32, %c8_i32_28 : i32
      %46 = tpu.assume_multiple %45, 8 : i32
      %47 = arith.index_cast %46 : i32 to index
      %c0_29 = arith.constant 0 : index
      %48 = vector.load %arg12[%47, %c0_29] : memref<48x512xf32, #tpu.memory_space<vmem>>, vector<8x512xf32>
      %49 = arith.truncf %42 : vector<8x128xf32> to vector<8x128xbf16>
      %c0_30 = arith.constant 0 : index
      %c0_31 = arith.constant 0 : index
      %50 = vector.load %arg3[%c0_30, %c0_31] : memref<128x512xbf16, #tpu.memory_space<vmem>>, vector<128x512xbf16>
      %cst_32 = arith.constant dense<0.000000e+00> : vector<8x512xf32>
      %51 = tpu.matmul %49, %50, %cst_32 {dimension_numbers = #tpu.dot_dimension_numbers<[1], [0], [0], [1], [0, 0, 1, 1], [], []>} : vector<8x128xbf16>, vector<128x512xbf16>, vector<8x512xf32> -> vector<8x512xf32>
      %52 = arith.addf %48, %51 : vector<8x512xf32>
      %53 = vector.extract_strided_slice %52 {offsets = [0, 0], sizes = [8, 384], strides = [1, 1]} : vector<8x512xf32> to vector<8x384xf32>
      %54 = arith.negf %53 : vector<8x384xf32>
      %55 = math.exp %54 : vector<8x384xf32>
      %cst_33 = arith.constant 1.000000e+00 : f32
      %56 = vector.broadcast %cst_33 : f32 to vector<8x384xf32>
      %57 = arith.addf %56, %55 : vector<8x384xf32>
      %58 = arith.divf %56, %57 : vector<8x384xf32>
      %59 = vector.extract_strided_slice %52 {offsets = [0, 384], sizes = [8, 128], strides = [1, 1]} : vector<8x512xf32> to vector<8x128xf32>
      %60 = math.tanh %59 : vector<8x128xf32>
      %61 = vector.extract_strided_slice %58 {offsets = [0, 0], sizes = [8, 128], strides = [1, 1]} : vector<8x384xf32> to vector<8x128xf32>
      %62 = vector.extract_strided_slice %58 {offsets = [0, 128], sizes = [8, 128], strides = [1, 1]} : vector<8x384xf32> to vector<8x128xf32>
      %63 = vector.extract_strided_slice %58 {offsets = [0, 256], sizes = [8, 128], strides = [1, 1]} : vector<8x384xf32> to vector<8x128xf32>
      %64 = arith.mulf %62, %40 : vector<8x128xf32>
      %65 = arith.mulf %61, %60 : vector<8x128xf32>
      %66 = arith.addf %64, %65 : vector<8x128xf32>
      %67 = math.tanh %66 : vector<8x128xf32>
      %68 = arith.mulf %63, %67 : vector<8x128xf32>
      %69 = arith.index_cast %46 : i32 to index
      %c0_34 = arith.constant 0 : index
      %70 = vector.load %arg13[%69, %c0_34] : memref<48x128xf32, #tpu.memory_space<vmem>>, vector<8x128xf32>
      tpu.vector_store %arg13[%69, %c0_34], %68 {strides = array<i32>} : memref<48x128xf32, #tpu.memory_space<vmem>>, vector<8x128xf32>,
      %c2_i32 = arith.constant 2 : i32
      %c8_i32_35 = arith.constant 8 : i32
      %71 = arith.muli %c2_i32, %c8_i32_35 : i32
      %72 = tpu.assume_multiple %71, 8 : i32
      %73 = arith.index_cast %72 : i32 to index
      %c0_36 = arith.constant 0 : index
      %74 = vector.load %arg12[%73, %c0_36] : memref<48x512xf32, #tpu.memory_space<vmem>>, vector<8x512xf32>
      %75 = arith.truncf %68 : vector<8x128xf32> to vector<8x128xbf16>
      %c0_37 = arith.constant 0 : index
      %c0_38 = arith.constant 0 : index
      %76 = vector.load %arg3[%c0_37, %c0_38] : memref<128x512xbf16, #tpu.memory_space<vmem>>, vector<128x512xbf16>
      %cst_39 = arith.constant dense<0.000000e+00> : vector<8x512xf32>
      %77 = tpu.matmul %75, %76, %cst_39 {dimension_numbers = #tpu.dot_dimension_numbers<[1], [0], [0], [1], [0, 0, 1, 1], [], []>} : vector<8x128xbf16>, vector<128x512xbf16>, vector<8x512xf32> -> vector<8x512xf32>
      %78 = arith.addf %74, %77 : vector<8x512xf32>
      %79 = vector.extract_strided_slice %78 {offsets = [0, 0], sizes = [8, 384], strides = [1, 1]} : vector<8x512xf32> to vector<8x384xf32>
      %80 = arith.negf %79 : vector<8x384xf32>
      %81 = math.exp %80 : vector<8x384xf32>
      %cst_40 = arith.constant 1.000000e+00 : f32
      %82 = vector.broadcast %cst_40 : f32 to vector<8x384xf32>
      %83 = arith.addf %82, %81 : vector<8x384xf32>
      %84 = arith.divf %82, %83 : vector<8x384xf32>
      %85 = vector.extract_strided_slice %78 {offsets = [0, 384], sizes = [8, 128], strides = [1, 1]} : vector<8x512xf32> to vector<8x128xf32>
      %86 = math.tanh %85 : vector<8x128xf32>
      %87 = vector.extract_strided_slice %84 {offsets = [0, 0], sizes = [8, 128], strides = [1, 1]} : vector<8x384xf32> to vector<8x128xf32>
      %88 = vector.extract_strided_slice %84 {offsets = [0, 128], sizes = [8, 128], strides = [1, 1]} : vector<8x384xf32> to vector<8x128xf32>
      %89 = vector.extract_strided_slice %84 {offsets = [0, 256], sizes = [8, 128], strides = [1, 1]} : vector<8x384xf32> to vector<8x128xf32>
      %90 = arith.mulf %88, %66 : vector<8x128xf32>
      %91 = arith.mulf %87, %86 : vector<8x128xf32>
      %92 = arith.addf %90, %91 : vector<8x128xf32>
      %93 = math.tanh %92 : vector<8x128xf32>
      %94 = arith.mulf %89, %93 : vector<8x128xf32>
      %95 = arith.index_cast %72 : i32 to index
      %c0_41 = arith.constant 0 : index
      %96 = vector.load %arg13[%95, %c0_41] : memref<48x128xf32, #tpu.memory_space<vmem>>, vector<8x128xf32>
      tpu.vector_store %arg13[%95, %c0_41], %94 {strides = array<i32>} : memref<48x128xf32, #tpu.memory_space<vmem>>, vector<8x128xf32>,
      %c3_i32 = arith.constant 3 : i32
      %c8_i32_42 = arith.constant 8 : i32
      %97 = arith.muli %c3_i32, %c8_i32_42 : i32
      %98 = tpu.assume_multiple %97, 8 : i32
      %99 = arith.index_cast %98 : i32 to index
      %c0_43 = arith.constant 0 : index
      %100 = vector.load %arg12[%99, %c0_43] : memref<48x512xf32, #tpu.memory_space<vmem>>, vector<8x512xf32>
      %101 = arith.truncf %94 : vector<8x128xf32> to vector<8x128xbf16>
      %c0_44 = arith.constant 0 : index
      %c0_45 = arith.constant 0 : index
      %102 = vector.load %arg3[%c0_44, %c0_45] : memref<128x512xbf16, #tpu.memory_space<vmem>>, vector<128x512xbf16>
      %cst_46 = arith.constant dense<0.000000e+00> : vector<8x512xf32>
      %103 = tpu.matmul %101, %102, %cst_46 {dimension_numbers = #tpu.dot_dimension_numbers<[1], [0], [0], [1], [0, 0, 1, 1], [], []>} : vector<8x128xbf16>, vector<128x512xbf16>, vector<8x512xf32> -> vector<8x512xf32>
      %104 = arith.addf %100, %103 : vector<8x512xf32>
      %105 = vector.extract_strided_slice %104 {offsets = [0, 0], sizes = [8, 384], strides = [1, 1]} : vector<8x512xf32> to vector<8x384xf32>
      %106 = arith.negf %105 : vector<8x384xf32>
      %107 = math.exp %106 : vector<8x384xf32>
      %cst_47 = arith.constant 1.000000e+00 : f32
      %108 = vector.broadcast %cst_47 : f32 to vector<8x384xf32>
      %109 = arith.addf %108, %107 : vector<8x384xf32>
      %110 = arith.divf %108, %109 : vector<8x384xf32>
      %111 = vector.extract_strided_slice %104 {offsets = [0, 384], sizes = [8, 128], strides = [1, 1]} : vector<8x512xf32> to vector<8x128xf32>
      %112 = math.tanh %111 : vector<8x128xf32>
      %113 = vector.extract_strided_slice %110 {offsets = [0, 0], sizes = [8, 128], strides = [1, 1]} : vector<8x384xf32> to vector<8x128xf32>
      %114 = vector.extract_strided_slice %110 {offsets = [0, 128], sizes = [8, 128], strides = [1, 1]} : vector<8x384xf32> to vector<8x128xf32>
      %115 = vector.extract_strided_slice %110 {offsets = [0, 256], sizes = [8, 128], strides = [1, 1]} : vector<8x384xf32> to vector<8x128xf32>
      %116 = arith.mulf %114, %92 : vector<8x128xf32>
      %117 = arith.mulf %113, %112 : vector<8x128xf32>
      %118 = arith.addf %116, %117 : vector<8x128xf32>
      %119 = math.tanh %118 : vector<8x128xf32>
      %120 = arith.mulf %115, %119 : vector<8x128xf32>
      %121 = arith.index_cast %98 : i32 to index
      %c0_48 = arith.constant 0 : index
      %122 = vector.load %arg13[%121, %c0_48] : memref<48x128xf32, #tpu.memory_space<vmem>>, vector<8x128xf32>
      tpu.vector_store %arg13[%121, %c0_48], %120 {strides = array<i32>} : memref<48x128xf32, #tpu.memory_space<vmem>>, vector<8x128xf32>,
      %c4_i32 = arith.constant 4 : i32
      %c8_i32_49 = arith.constant 8 : i32
      %123 = arith.muli %c4_i32, %c8_i32_49 : i32
      %124 = tpu.assume_multiple %123, 8 : i32
      %125 = arith.index_cast %124 : i32 to index
      %c0_50 = arith.constant 0 : index
      %126 = vector.load %arg12[%125, %c0_50] : memref<48x512xf32, #tpu.memory_space<vmem>>, vector<8x512xf32>
      %127 = arith.truncf %120 : vector<8x128xf32> to vector<8x128xbf16>
      %c0_51 = arith.constant 0 : index
      %c0_52 = arith.constant 0 : index
      %128 = vector.load %arg3[%c0_51, %c0_52] : memref<128x512xbf16, #tpu.memory_space<vmem>>, vector<128x512xbf16>
      %cst_53 = arith.constant dense<0.000000e+00> : vector<8x512xf32>
      %129 = tpu.matmul %127, %128, %cst_53 {dimension_numbers = #tpu.dot_dimension_numbers<[1], [0], [0], [1], [0, 0, 1, 1], [], []>} : vector<8x128xbf16>, vector<128x512xbf16>, vector<8x512xf32> -> vector<8x512xf32>
      %130 = arith.addf %126, %129 : vector<8x512xf32>
      %131 = vector.extract_strided_slice %130 {offsets = [0, 0], sizes = [8, 384], strides = [1, 1]} : vector<8x512xf32> to vector<8x384xf32>
      %132 = arith.negf %131 : vector<8x384xf32>
      %133 = math.exp %132 : vector<8x384xf32>
      %cst_54 = arith.constant 1.000000e+00 : f32
      %134 = vector.broadcast %cst_54 : f32 to vector<8x384xf32>
      %135 = arith.addf %134, %133 : vector<8x384xf32>
      %136 = arith.divf %134, %135 : vector<8x384xf32>
      %137 = vector.extract_strided_slice %130 {offsets = [0, 384], sizes = [8, 128], strides = [1, 1]} : vector<8x512xf32> to vector<8x128xf32>
      %138 = math.tanh %137 : vector<8x128xf32>
      %139 = vector.extract_strided_slice %136 {offsets = [0, 0], sizes = [8, 128], strides = [1, 1]} : vector<8x384xf32> to vector<8x128xf32>
      %140 = vector.extract_strided_slice %136 {offsets = [0, 128], sizes = [8, 128], strides = [1, 1]} : vector<8x384xf32> to vector<8x128xf32>
      %141 = vector.extract_strided_slice %136 {offsets = [0, 256], sizes = [8, 128], strides = [1, 1]} : vector<8x384xf32> to vector<8x128xf32>
      %142 = arith.mulf %140, %118 : vector<8x128xf32>
      %143 = arith.mulf %139, %138 : vector<8x128xf32>
      %144 = arith.addf %142, %143 : vector<8x128xf32>
      %145 = math.tanh %144 : vector<8x128xf32>
      %146 = arith.mulf %141, %145 : vector<8x128xf32>
      %147 = arith.index_cast %124 : i32 to index
      %c0_55 = arith.constant 0 : index
      %148 = vector.load %arg13[%147, %c0_55] : memref<48x128xf32, #tpu.memory_space<vmem>>, vector<8x128xf32>
      tpu.vector_store %arg13[%147, %c0_55], %146 {strides = array<i32>} : memref<48x128xf32, #tpu.memory_space<vmem>>, vector<8x128xf32>,
      %c5_i32 = arith.constant 5 : i32
      %c8_i32_56 = arith.constant 8 : i32
      %149 = arith.muli %c5_i32, %c8_i32_56 : i32
      %150 = tpu.assume_multiple %149, 8 : i32
      %151 = arith.index_cast %150 : i32 to index
      %c0_57 = arith.constant 0 : index
      %152 = vector.load %arg12[%151, %c0_57] : memref<48x512xf32, #tpu.memory_space<vmem>>, vector<8x512xf32>
      %153 = arith.truncf %146 : vector<8x128xf32> to vector<8x128xbf16>
      %c0_58 = arith.constant 0 : index
      %c0_59 = arith.constant 0 : index
      %154 = vector.load %arg3[%c0_58, %c0_59] : memref<128x512xbf16, #tpu.memory_space<vmem>>, vector<128x512xbf16>
      %cst_60 = arith.constant dense<0.000000e+00> : vector<8x512xf32>
      %155 = tpu.matmul %153, %154, %cst_60 {dimension_numbers = #tpu.dot_dimension_numbers<[1], [0], [0], [1], [0, 0, 1, 1], [], []>} : vector<8x128xbf16>, vector<128x512xbf16>, vector<8x512xf32> -> vector<8x512xf32>
      %156 = arith.addf %152, %155 : vector<8x512xf32>
      %157 = vector.extract_strided_slice %156 {offsets = [0, 0], sizes = [8, 384], strides = [1, 1]} : vector<8x512xf32> to vector<8x384xf32>
      %158 = arith.negf %157 : vector<8x384xf32>
      %159 = math.exp %158 : vector<8x384xf32>
      %cst_61 = arith.constant 1.000000e+00 : f32
      %160 = vector.broadcast %cst_61 : f32 to vector<8x384xf32>
      %161 = arith.addf %160, %159 : vector<8x384xf32>
      %162 = arith.divf %160, %161 : vector<8x384xf32>
      %163 = vector.extract_strided_slice %156 {offsets = [0, 384], sizes = [8, 128], strides = [1, 1]} : vector<8x512xf32> to vector<8x128xf32>
      %164 = math.tanh %163 : vector<8x128xf32>
      %165 = vector.extract_strided_slice %162 {offsets = [0, 0], sizes = [8, 128], strides = [1, 1]} : vector<8x384xf32> to vector<8x128xf32>
      %166 = vector.extract_strided_slice %162 {offsets = [0, 128], sizes = [8, 128], strides = [1, 1]} : vector<8x384xf32> to vector<8x128xf32>
      %167 = vector.extract_strided_slice %162 {offsets = [0, 256], sizes = [8, 128], strides = [1, 1]} : vector<8x384xf32> to vector<8x128xf32>
      %168 = arith.mulf %166, %144 : vector<8x128xf32>
      %169 = arith.mulf %165, %164 : vector<8x128xf32>
      %170 = arith.addf %168, %169 : vector<8x128xf32>
      %171 = math.tanh %170 : vector<8x128xf32>
      %172 = arith.mulf %167, %171 : vector<8x128xf32>
      %173 = arith.index_cast %150 : i32 to index
      %c0_62 = arith.constant 0 : index
      %174 = vector.load %arg13[%173, %c0_62] : memref<48x128xf32, #tpu.memory_space<vmem>>, vector<8x128xf32>
      tpu.vector_store %arg13[%173, %c0_62], %172 {strides = array<i32>} : memref<48x128xf32, #tpu.memory_space<vmem>>, vector<8x128xf32>,
      %c6_i32 = arith.constant 6 : i32
      %c0_63 = arith.constant 0 : index
      %c0_64 = arith.constant 0 : index
      %175 = vector.load %arg10[%c0_63, %c0_64] : memref<8x128xf32, #tpu.memory_space<vmem>>, vector<8x128xf32>
      tpu.vector_store %arg10[%c0_63, %c0_64], %172 {strides = array<i32>} : memref<8x128xf32, #tpu.memory_space<vmem>>, vector<8x128xf32>,
      %c0_65 = arith.constant 0 : index
      %c0_66 = arith.constant 0 : index
      %176 = vector.load %arg11[%c0_65, %c0_66] : memref<8x128xf32, #tpu.memory_space<vmem>>, vector<8x128xf32>
      tpu.vector_store %arg11[%c0_65, %c0_66], %170 {strides = array<i32>} : memref<8x128xf32, #tpu.memory_space<vmem>>, vector<8x128xf32>,
      %c0_67 = arith.constant 0 : index
      %c0_68 = arith.constant 0 : index
      %177 = vector.load %arg13[%c0_67, %c0_68] : memref<48x128xf32, #tpu.memory_space<vmem>>, vector<48x128xf32>
      %178 = arith.truncf %177 : vector<48x128xf32> to vector<48x128xbf16>
      %c0_69 = arith.constant 0 : index
      %c0_70 = arith.constant 0 : index
      %179 = vector.load %arg14[%c0_69, %c0_70] : memref<48x128xbf16, #tpu.memory_space<vmem>>, vector<48x128xbf16>
      tpu.vector_store %arg14[%c0_69, %c0_70], %178 {strides = array<i32>} : memref<48x128xbf16, #tpu.memory_space<vmem>>, vector<48x128xbf16>,
    } else {
    }
    %c0 = arith.constant 0 : index
    %c0_1 = arith.constant 0 : index
    %3 = vector.load %arg14[%c0, %c0_1] : memref<48x128xbf16, #tpu.memory_space<vmem>>, vector<48x128xbf16>
    %c0_2 = arith.constant 0 : index
    %c0_3 = arith.constant 0 : index
    %4 = vector.load %arg7[%c0_2, %c0_3] : memref<128x128xbf16, #tpu.memory_space<vmem>>, vector<128x128xbf16>
    %cst = arith.constant dense<0.000000e+00> : vector<48x128xf32>
    %5 = tpu.matmul %3, %4, %cst {dimension_numbers = #tpu.dot_dimension_numbers<[1], [0], [0], [1], [0, 0, 1, 1], [], []>} : vector<48x128xbf16>, vector<128x128xbf16>, vector<48x128xf32> -> vector<48x128xf32>
    %c0_4 = arith.constant 0 : index
    %c0_5 = arith.constant 0 : index
    %6 = vector.load %arg8[%c0_4, %c0_5] : memref<1x128xf32, #tpu.memory_space<vmem>>, vector<1x128xf32>
    %7 = vector.broadcast %6 : vector<1x128xf32> to vector<48x128xf32>
    %8 = arith.addf %5, %7 : vector<48x128xf32>
    %c0_6 = arith.constant 0 : index
    %c0_7 = arith.constant 0 : index
    %9 = vector.load %arg9[%c0_6, %c0_7] : memref<48x128xf32, #tpu.memory_space<vmem>>, vector<48x128xf32>
    tpu.vector_store %arg9[%c0_6, %c0_7], %8 {strides = array<i32>} : memref<48x128xf32, #tpu.memory_space<vmem>>, vector<48x128xf32>,
    return
  }
  func.func @transform_0(%arg0: i32) -> (i32, i32) {
    %c0_i32 = arith.constant 0 : i32
    %c0_i32_0 = arith.constant 0 : i32
    %c0_i32_1 = arith.constant 0 : i32
    return %c0_i32, %c0_i32_0 : i32, i32
  }
  func.func @transform_1(%arg0: i32) -> (i32, i32) {
    %c0_i32 = arith.constant 0 : i32
    %c0_i32_0 = arith.constant 0 : i32
    %c0_i32_1 = arith.constant 0 : i32
    return %c0_i32, %c0_i32_0 : i32, i32
  }
  func.func @transform_2(%arg0: i32) -> (i32, i32) {
    %c0_i32 = arith.constant 0 : i32
    %c0_i32_0 = arith.constant 0 : i32
    %c0_i32_1 = arith.constant 0 : i32
    return %c0_i32, %c0_i32_0 : i32, i32
  }
  func.func @transform_3(%arg0: i32) -> (i32, i32) {
    %c0_i32 = arith.constant 0 : i32
    %c0_i32_0 = arith.constant 0 : i32
    %c0_i32_1 = arith.constant 0 : i32
    return %c0_i32, %c0_i32_0 : i32, i32
  }
  func.func @transform_4(%arg0: i32) -> (i32, i32) {
    %c0_i32 = arith.constant 0 : i32
    %c0_i32_0 = arith.constant 0 : i32
    %c0_i32_1 = arith.constant 0 : i32
    return %c0_i32, %c0_i32_0 : i32, i32
  }
  func.func @transform_5(%arg0: i32) -> (i32, i32) {
    %c0_i32 = arith.constant 0 : i32
    %c0_i32_0 = arith.constant 0 : i32
    %c0_i32_1 = arith.constant 0 : i32
    return %c0_i32, %c0_i32_0 : i32, i32
  }
  func.func @transform_6(%arg0: i32) -> (i32, i32) {
    %c0_i32 = arith.constant 0 : i32
    %c0_i32_0 = arith.constant 0 : i32
    return %c0_i32, %arg0 : i32, i32
  }
  func.func @transform_7(%arg0: i32) -> (i32, i32) {
    %c0_i32 = arith.constant 0 : i32
    %c0_i32_0 = arith.constant 0 : i32
    return %c0_i32, %arg0 : i32, i32
  }
  func.func @transform_8(%arg0: i32) -> (i32, i32) {
    %c0_i32 = arith.constant 0 : i32
    %c0_i32_0 = arith.constant 0 : i32
    return %c0_i32, %arg0 : i32, i32
  }
  func.func @transform_9(%arg0: i32) -> (i32, i32) {
    %c0_i32 = arith.constant 0 : i32
    %c0_i32_0 = arith.constant 0 : i32
    %c0_i32_1 = arith.constant 0 : i32
    return %c0_i32, %c0_i32_0 : i32, i32
  }
  func.func @transform_10(%arg0: i32) -> (i32, i32) {
    %c0_i32 = arith.constant 0 : i32
    %c0_i32_0 = arith.constant 0 : i32
    %c0_i32_1 = arith.constant 0 : i32
    return %c0_i32, %c0_i32_0 : i32, i32
  }
}

</mosaic_0001>

<bundles_post_ra>
// kernel: rnn_caption_forward.1
= control target key start
LH: loop header
LB: loop body
LE: loop exit
PB: predicated region body
PF: predicated region fallthrough
CT: control target
= control target key end

     0   :  { %s4837_s0 = inlined_call_operand.vmem [shape: bf16[48,128], index: 0, kind: input, shape index: {}]   ;;  %s4838_s1 = inlined_call_operand.vmem [shape: bf16[128,512], index: 1, kind: input, shape index: {}]   ;;  %s4839_s2 = inlined_call_operand.vmem [shape: bf16[128,512], index: 2, kind: input, shape index: {}]   ;;  %s4840_s3 = inlined_call_operand.vmem [shape: f32[1,512], index: 3, kind: input, shape index: {}]   ;;  %s4841_s4 = inlined_call_operand.vmem [shape: f32[8,128], index: 4, kind: input, shape index: {}]   ;;  %s4842_s5 = inlined_call_operand.vmem [shape: f32[8,128], index: 5, kind: input, shape index: {}]   ;;  %s4843_s6 = inlined_call_operand.vmem [shape: bf16[128,256], index: 6, kind: input, shape index: {}]   ;;  %s4844_s7 = inlined_call_operand.vmem [shape: f32[1,256], index: 7, kind: input, shape index: {}]   ;;  %s4845_s8 = inlined_call_operand.hbm [shape: f32[48,256], index: 8, kind: output, shape index: {0}]   ;;  %s4846_s9 = inlined_call_operand.hbm [shape: f32[8,128], index: 9, kind: output, shape index: {1}]   ;;  %s4847_s10 = inlined_call_operand.hbm [shape: f32[8,128], index: 10, kind: output, shape index: {2}]  }
   0x1   :  { %4851 = sst [smem:[#allocation29_spill]] %s4843_s6 }
   0x2   :  { %16 = vsyncpa [#allocation7], 0 }
   0x3   :  { %18 = vsyncpa [#allocation7 + $0x1], 0 }
   0x4   :  { %19 = vsyncpa [#allocation9], 0  ;;  %s3919_s13 = smov 0   ;;  %s3921_s14 = smov 0  }
   0x5   :  { %s3923_s15 = smov 0   ;;  %s3925_s16 = smov 0  }
   0x6 LB: > { %4852 = sst [smem:[#allocation13_spill]] %s3849_s15  ;;  %s3940_s17 = sadd.s32 4294967295, %s3853_s16   ;;  %s3853_s16 = sphi %s3925_s16, %s4891_s16   ;;  %s3849_s15 = sphi %s3923_s15, %s4888_s15   ;;  %s3845_s14 = sphi %s3921_s14, %s4890_s14   ;;  %s3841_s13 = sphi %s3919_s13, %s4889_s13  }
   0x7   : > { %s3071_s18 = sadd.s32 4294967294, %s3853_s16   ;;  %s3944_s19 = sadd.s32 1, %s3853_s16  }
   0x8   : > { %s158_s20 = sadd.s32 1, %s3849_s15  ;;  %s155_s21 = ssub.s32 %s3853_s16, %s3944_s19 }
   0x9   : > { %p165_p0 = scmp.ne.s32.totalorder %s3849_s15, %s3845_s14  ;;  %p156_p1 = scmp.eq.s32.totalorder %s155_s21, 0 }
   0xa   : > { %p166_p2 = scmp.eq.s32.totalorder %s3853_s16, 0  ;;  %p221_p3 = scmp.eq.s32.totalorder %s3940_s17, 1 }
   0xb   : > { %p226_p4 = scmp.ne.s32.totalorder %s3845_s14, %s3841_s13  ;;  %p227_p7 = scmp.eq.s32.totalorder %s3071_s18, 1 }
   0xc   : > { %s3956_s22 = scalar_select %p156_p1, %s3849_s15, %s158_s20  }
   0xd   : > { %p167_p5 = por %p166_p2, %p165_p0  ;;  %p3960_p6 = por %p221_p3, %p165_p0 }
   0xe   : > { %4853 = sst [smem:[#allocation14_spill]] %s3956_s22  ;;  %p3964_p8 = por %p227_p7, %p226_p4 }
   0xf   : > { %p3073_p9 = scmp.ge.s32.totalorder %s3853_s16, 2 }
  0x11   : > { %303 = sbr.rel (%p3073_p9) target bundleno = 42 (0x2a), region = 40 }
  0x16   : > { %306 = sbr.rel (!%p167_p5) target bundleno = 42 (0x2a), region = 44  ;;  %s308_s25 = sand.u32 (%p167_p5), 1, %s3849_s15  }
  0x17   : > { %s3075_s26 = sshll.u32 (%p167_p5), %s3853_s16, 2  ;;  %s3074_s27 = sshll.u32 (%p167_p5), %s308_s25, 6 }
  0x18   : > { %s4856_s6 = sld [smem:[#allocation29_spill]] (%p167_p5)  ;;  %s310_s11 = scalar_lea.vmem (%p167_p5), [#allocation5], %s3074_s27 }
  0x1e   : > { %s3976_s30 = scalar_lea.vmem %s4856_s6, %s3075_s26 }
  0x1f   : > { %v329_v0 = vld [vmem:[%s3976_s30] sm:$0xf]  ;;  %v331_v1 = vld [vmem:[%s3976_s30 + $0x8] sm:$0xf]  ;;  %v333_v2 = vld [vmem:[%s3976_s30 + $0x10] sm:$0xf] }
  0x20   : > { %330 = vst [vmem:[%s310_s11] sm:$0xf] %v329_v0  ;;  %332 = vst [vmem:[%s310_s11 + $0x4] sm:$0xf] %v331_v1  ;;  %v335_v3 = vld [vmem:[%s3976_s30 + $0x18] sm:$0xf] }
  0x21   : > { %v337_v4 = vld [vmem:[%s3976_s30 + $0x20] sm:$0xf]  ;;  %334 = vst [vmem:[%s310_s11 + $0x8] sm:$0xf] %v333_v2  ;;  %336 = vst [vmem:[%s310_s11 + $0xc] sm:$0xf] %v335_v3 }
  0x22   : > { %338 = vst [vmem:[%s310_s11 + $0x10] sm:$0xf] %v337_v4  ;;  %v339_v5 = vld [vmem:[%s3976_s30 + $0x28] sm:$0xf]  ;;  %v341_v6 = vld [vmem:[%s3976_s30 + $0x30] sm:$0xf] }
  0x23   : > { %v343_v7 = vld [vmem:[%s3976_s30 + $0x38] sm:$0xf]  ;;  %340 = vst [vmem:[%s310_s11 + $0x14] sm:$0xf] %v339_v5  ;;  %342 = vst [vmem:[%s310_s11 + $0x18] sm:$0xf] %v341_v6 }
  0x24   : > { %344 = vst [vmem:[%s310_s11 + $0x1c] sm:$0xf] %v343_v7  ;;  %v345_v8 = vld [vmem:[%s3976_s30 + $0x40] sm:$0xf]  ;;  %v347_v9 = vld [vmem:[%s3976_s30 + $0x48] sm:$0xf] }
  0x25   : > { %v349_v10 = vld [vmem:[%s3976_s30 + $0x50] sm:$0xf]  ;;  %346 = vst [vmem:[%s310_s11 + $0x20] sm:$0xf] %v345_v8  ;;  %348 = vst [vmem:[%s310_s11 + $0x24] sm:$0xf] %v347_v9 }
  0x26   : > { %350 = vst [vmem:[%s310_s11 + $0x28] sm:$0xf] %v349_v10  ;;  %v351_v11 = vld [vmem:[%s3976_s30 + $0x58] sm:$0xf]  ;;  %v353_v12 = vld [vmem:[%s3976_s30 + $0x60] sm:$0xf] }
  0x27   : > { %v355_v13 = vld [vmem:[%s3976_s30 + $0x68] sm:$0xf]  ;;  %352 = vst [vmem:[%s310_s11 + $0x2c] sm:$0xf] %v351_v11  ;;  %354 = vst [vmem:[%s310_s11 + $0x30] sm:$0xf] %v353_v12 }
  0x28   : > { %356 = vst [vmem:[%s310_s11 + $0x34] sm:$0xf] %v355_v13  ;;  %v357_v14 = vld [vmem:[%s3976_s30 + $0x70] sm:$0xf]  ;;  %v359_v15 = vld [vmem:[%s3976_s30 + $0x78] sm:$0xf] }
  0x29   : > { %358 = vst [vmem:[%s310_s11 + $0x38] sm:$0xf] %v357_v14  ;;  %360 = vst [vmem:[%s310_s11 + $0x3c] sm:$0xf] %v359_v15 }
  0x2a PF: > { %p3076_p10 = scmp.ge.s32.totalorder %s3853_s16, 1  ;;  %p421_p11 = scmp.lt.s32.totalorder %s3853_s16, 3 }
  0x2c   : > { %p422_p12 = pnand %p3076_p10, %p421_p11 }
  0x2d   : > { %s3997_s12 = sand.u32 (!%p422_p12), 1, %s3845_s14   ;;  %p468_p13 = scmp.lt.s32.totalorder (!%p422_p12), %s3940_s17, 1 }
  0x2e   : > { %425 = sbr.rel (%p422_p12) target bundleno = 1887 (0x75f), region = 89  ;;  %s3077_s18 = sshll.u32 (!%p422_p12), %s3997_s12, 6 }
  0x2f   : > { %s3427_s20 = smul.u32 (!%p422_p12), 48, %s3997_s12  ;;  %s4009_s28 = scalar_lea.vmem (!%p422_p12), [#allocation5], %s3077_s18 }
  0x30   : > { %p3078_p0 = scmp.ne.s32.totalorder (!%p422_p12), %s3940_s17, 0 }
  0x31   : > { %s4011_s29 = scalar_lea.vmem (!%p422_p12), [#allocation6], %s3427_s20 }
  0x33   : > { %s4003_s21 = scalar_select %p468_p13, %s3940_s17, 1 }
  0x34   : > { %475 = sbr.rel (%p3078_p0) target bundleno = 1630 (0x65e), region = 97 }
  0x39   : > { %v3487_v16 = vld [vmem:[%s4838_s1 + $0xe4] ss:$16 sps:$4 sm:$0xff]   ;;  %v3489_v17 = vld [vmem:[%s4838_s1 + $0xec] ss:$16 sps:$4 sm:$0xff]   ;;  %v4849_v18 = vmov 0  }
  0x3a   : > { %746 = vmatprep.mubr.bf16.mxu0 %v4849_v18  ;;  %809 = vmatprep.mubr.bf16.mxu1 %v4849_v18  ;;  %v3491_v19 = vld [vmem:[%s4838_s1 + $0xe0] ss:$16 sps:$4 sm:$0xff]   ;;  %v3492_v20 = vld [vmem:[%s4838_s1 + $0xe8] ss:$16 sps:$4 sm:$0xff]   ;;  %v3493_v21 = vld [vmem:[%s4838_s1 + $0xc4] ss:$16 sps:$4 sm:$0xff]  }
  0x3b   : > { %714 = vmatprep.subr.bf16.mxu0 %v3487_v16  ;;  %777 = vmatprep.subr.bf16.mxu1 %v3489_v17  ;;  %v3495_v22 = vld [vmem:[%s4838_s1 + $0xcc] ss:$16 sps:$4 sm:$0xff]   ;;  %v3497_v23 = vld [vmem:[%s4838_s1 + $0xc0] ss:$16 sps:$4 sm:$0xff]   ;;  %v3498_v24 = vld [vmem:[%s4838_s1 + $0xc8] ss:$16 sps:$4 sm:$0xff]  }
  0x3c   : > { %715 = vmatpush1.bf16.msra.mxu0 %v3491_v19  ;;  %778 = vmatpush1.bf16.msra.mxu1 %v3492_v20  ;;  %v3499_v25 = vld [vmem:[%s4838_s1 + $0xa4] ss:$16 sps:$4 sm:$0xff]   ;;  %v3501_v26 = vld [vmem:[%s4838_s1 + $0xac] ss:$16 sps:$4 sm:$0xff]   ;;  %v3503_v27 = vld [vmem:[%s4838_s1 + $0xa0] ss:$16 sps:$4 sm:$0xff]  }
  0x3d   : > { %716 = vmatprep.subr.bf16.mxu0 %v3493_v21  ;;  %779 = vmatprep.subr.bf16.mxu1 %v3495_v22  ;;  %v3504_v28 = vld [vmem:[%s4838_s1 + $0xa8] ss:$16 sps:$4 sm:$0xff]   ;;  %v3505_v29 = vld [vmem:[%s4838_s1 + $0x84] ss:$16 sps:$4 sm:$0xff]   ;;  %v3507_v30 = vld [vmem:[%s4838_s1 + $0x8c] ss:$16 sps:$4 sm:$0xff]  }
  0x3e   : > { %v3509_v31 = vld [vmem:[%s4838_s1 + $0x80] ss:$16 sps:$4 sm:$0xff]   ;;  %v3510_v32 = vld [vmem:[%s4838_s1 + $0x88] ss:$16 sps:$4 sm:$0xff]   ;;  %v3511_v33 = vld [vmem:[%s4838_s1 + $0x64] ss:$16 sps:$4 sm:$0xff]  }
  0x3f   : > { %v3513_v34 = vld [vmem:[%s4838_s1 + $0x6c] ss:$16 sps:$4 sm:$0xff]   ;;  %v3515_v35 = vld [vmem:[%s4838_s1 + $0x60] ss:$16 sps:$4 sm:$0xff]   ;;  %v3516_v36 = vld [vmem:[%s4838_s1 + $0x68] ss:$16 sps:$4 sm:$0xff]  }
  0x40   : > { %717 = vmatpush1.bf16.msra.mxu0 %v3497_v23  ;;  %780 = vmatpush1.bf16.msra.mxu1 %v3498_v24  ;;  %v3517_v37 = vld [vmem:[%s4838_s1 + $0x44] ss:$16 sps:$4 sm:$0xff]   ;;  %v3519_v38 = vld [vmem:[%s4838_s1 + $0x4c] ss:$16 sps:$4 sm:$0xff]   ;;  %v3521_v39 = vld [vmem:[%s4838_s1 + $0x40] ss:$16 sps:$4 sm:$0xff]   ;;  %v516_v23 = vlaneseq }
  0x41   : > { %718 = vmatprep.subr.bf16.mxu0 %v3499_v25  ;;  %781 = vmatprep.subr.bf16.mxu1 %v3501_v26  ;;  %v3522_v40 = vld [vmem:[%s4838_s1 + $0x48] ss:$16 sps:$4 sm:$0xff]   ;;  %v3523_v41 = vld [vmem:[%s4838_s1 + $0x24] ss:$16 sps:$4 sm:$0xff]   ;;  %v3525_v42 = vld [vmem:[%s4838_s1 + $0x2c] ss:$16 sps:$4 sm:$0xff]  }
  0x42   : > { %v3527_v43 = vld [vmem:[%s4838_s1 + $0x20] ss:$16 sps:$4 sm:$0xff]   ;;  %v3528_v44 = vld [vmem:[%s4838_s1 + $0x28] ss:$16 sps:$4 sm:$0xff]   ;;  %v3529_v45 = vld [vmem:[%s4838_s1 + $0x4] ss:$16 sps:$4 sm:$0xff]  }
  0x43   : > { %v3531_v46 = vld [vmem:[%s4838_s1 + $0xc] ss:$16 sps:$4 sm:$0xff]   ;;  %v3533_v47 = vld [vmem:[%s4838_s1] ss:$16 sps:$4 sm:$0xff]   ;;  %v3534_v48 = vld [vmem:[%s4838_s1 + $0x8] ss:$16 sps:$4 sm:$0xff]  }
  0x44   : > { %719 = vmatpush1.bf16.msra.mxu0 %v3503_v27  ;;  %782 = vmatpush1.bf16.msra.mxu1 %v3504_v28  ;;  %v4115_v49 = vld [vmem:[%s4839_s2 + $0xe4] ss:$16 sps:$4 sm:$0xff]   ;;  %v4120_v50 = vld [vmem:[%s4839_s2 + $0xec] ss:$16 sps:$4 sm:$0xff]   ;;  %v4128_v52 = vld [vmem:[%s4839_s2 + $0xe0] ss:$16 sps:$4 sm:$0xff]  }
  0x45   : > { %720 = vmatprep.subr.bf16.mxu0 %v3505_v29  ;;  %783 = vmatprep.subr.bf16.mxu1 %v3507_v30  ;;  %v3535_v51 = vld [vmem:[%s4837_s0] sm:$0xff]   ;;  %v4133_v53 = vld [vmem:[%s4839_s2 + $0xe8] ss:$16 sps:$4 sm:$0xff]   ;;  %v4145_v55 = vld [vmem:[%s4839_s2 + $0xcc] ss:$16 sps:$4 sm:$0xff]   ;;  %v517_v24 = vshrl.u32 %v516_v23, 7 }
  0x46   : > { %v4140_v54 = vld [vmem:[%s4839_s2 + $0xc4] ss:$16 sps:$4 sm:$0xff]   ;;  %v4150_v56 = vld [vmem:[%s4839_s2 + $0xc0] ss:$16 sps:$4 sm:$0xff]   ;;  %v4157_v57 = vld [vmem:[%s4839_s2 + $0xc8] ss:$16 sps:$4 sm:$0xff]  }
  0x47   : > { %v4162_v58 = vld [vmem:[%s4839_s2 + $0xa4] ss:$16 sps:$4 sm:$0xff]   ;;  %v4169_v59 = vld [vmem:[%s4839_s2 + $0xac] ss:$16 sps:$4 sm:$0xff]   ;;  %v4174_v60 = vld [vmem:[%s4839_s2 + $0xa0] ss:$16 sps:$4 sm:$0xff]  }
  0x48   : > { %721 = vmatpush1.bf16.msra.mxu0 %v3509_v31  ;;  %784 = vmatpush1.bf16.msra.mxu1 %v3510_v32  ;;  %v3554_v61 = vld [vmem:[%s4837_s0 + $0x8] sm:$0xff]   ;;  %v4193_v63 = vld [vmem:[%s4839_s2 + $0x84] ss:$16 sps:$4 sm:$0xff]   ;;  %v4203_v1 = vld [vmem:[%s4839_s2 + $0x80] ss:$16 sps:$4 sm:$0xff]   ;;  %v526_v25 = vsub.s32 2, %v517_v24 }
  0x49   : > { %722 = vmatprep.subr.bf16.mxu0 %v3511_v33  ;;  %785 = vmatprep.subr.bf16.mxu1 %v3513_v34  ;;  %v4186_v62 = vld [vmem:[%s4839_s2 + $0xa8] ss:$16 sps:$4 sm:$0xff]   ;;  %v4198_v0 = vld [vmem:[%s4839_s2 + $0x8c] ss:$16 sps:$4 sm:$0xff]   ;;  %v4217_v3 = vld [vmem:[%s4839_s2 + $0x64] ss:$16 sps:$4 sm:$0xff]  }
  0x4a   : > { %v4210_v2 = vld [vmem:[%s4839_s2 + $0x88] ss:$16 sps:$4 sm:$0xff]   ;;  %v4222_v4 = vld [vmem:[%s4839_s2 + $0x6c] ss:$16 sps:$4 sm:$0xff]   ;;  %v4227_v5 = vld [vmem:[%s4839_s2 + $0x60] ss:$16 sps:$4 sm:$0xff]  }
  0x4b   : > { %v4232_v6 = vld [vmem:[%s4839_s2 + $0x68] ss:$16 sps:$4 sm:$0xff]   ;;  %v3567_v7 = vld [vmem:[%s4837_s0 + $0x10] sm:$0xff]   ;;  %v4247_v9 = vld [vmem:[%s4839_s2 + $0x4c] ss:$16 sps:$4 sm:$0xff]   ;;  %v518_v26 = vsub.s32 0, %v517_v24 }
  0x4c   : > { %723 = vmatpush1.bf16.msra.mxu0 %v3515_v35  ;;  %786 = vmatpush1.bf16.msra.mxu1 %v3516_v36  ;;  %v4242_v8 = vld [vmem:[%s4839_s2 + $0x44] ss:$16 sps:$4 sm:$0xff]   ;;  %v4256_v10 = vld [vmem:[%s4839_s2 + $0x40] ss:$16 sps:$4 sm:$0xff]   ;;  %v4261_v11 = vld [vmem:[%s4839_s2 + $0x48] ss:$16 sps:$4 sm:$0xff]  }
  0x4d   : > { %724 = vmatprep.subr.bf16.mxu0 %v3517_v37  ;;  %787 = vmatprep.subr.bf16.mxu1 %v3519_v38  ;;  %v4266_v12 = vld [vmem:[%s4839_s2 + $0x24] ss:$16 sps:$4 sm:$0xff]   ;;  %v4271_v13 = vld [vmem:[%s4839_s2 + $0x2c] ss:$16 sps:$4 sm:$0xff]   ;;  %v4280_v14 = vld [vmem:[%s4839_s2 + $0x20] ss:$16 sps:$4 sm:$0xff]  }
  0x4e   : > { %v4285_v15 = vld [vmem:[%s4839_s2 + $0x28] ss:$16 sps:$4 sm:$0xff]   ;;  %v4296_v16 = vld [vmem:[%s4839_s2 + $0x4] ss:$16 sps:$4 sm:$0xff]   ;;  %v4301_v17 = vld [vmem:[%s4839_s2 + $0xc] ss:$16 sps:$4 sm:$0xff]  }
  0x4f   : > { %v4308_v19 = vld [vmem:[%s4839_s2] ss:$16 sps:$4 sm:$0xff]   ;;  %v4313_v20 = vld [vmem:[%s4839_s2 + $0x8] ss:$16 sps:$4 sm:$0xff]   ;;  %v530_v27 = vsub.s32 3, %v517_v24  ;;  %v522_v31 = vsub.s32 1, %v517_v24 }
  0x50   : > { %725 = vmatpush1.bf16.msra.mxu0 %v3521_v39  ;;  %788 = vmatpush1.bf16.msra.mxu1 %v3522_v40  ;;  %v864_v21 = vld [vmem:[%s4841_s4] sm:$0xff] }
  0x51   : > { %726 = vmatprep.subr.bf16.mxu0 %v3523_v41  ;;  %789 = vmatprep.subr.bf16.mxu1 %v3525_v42  ;;  %v873_v22 = vpack.c.bf16 %v864_v21, %v864_v21  ;;  %v514_v28 = vld [vmem:[%s4840_s3] sm:$0xf] }
  0x52   : > { %v527_v32 = vrot.slane %v514_v28, %v526_v25  ;;  %v519_v35 = vrot.slane %v514_v28, %v518_v26  ;;  %v531_v36 = vrot.slane %v514_v28, %v530_v27  ;;  %v523_v39 = vrot.slane %v514_v28, %v522_v31 }
  0x54   : > { %727 = vmatpush1.bf16.msra.mxu0 %v3527_v43  ;;  %790 = vmatpush1.bf16.msra.mxu1 %v3528_v44 }
  0x55   : > { %728 = vmatprep.subr.bf16.mxu0 %v3529_v45  ;;  %791 = vmatprep.subr.bf16.mxu1 %v3531_v46 }
  0x58   : > { %729 = vmatpush1.bf16.msra.mxu0 %v3533_v47  ;;  %792 = vmatpush1.bf16.msra.mxu1 %v3534_v48 }
  0x59   : > { %1066 = vmatprep.subr.bf16.mxu0 %v4115_v49  ;;  %1107 = vmatprep.subr.bf16.mxu1 %v4120_v50 }
  0x5b   : > { %747 = vmatmul.mubr.bf16.vlgmr.msra.gmra.mxu0 %v3535_v51  ;;  %810 = vmatmul.mubr.bf16.vlgmr.msra.gmra.mxu1 %v3535_v51 }
  0x5c   : > { %1067 = vmatpush1.bf16.msra.mxu0 %v4128_v52  ;;  %1108 = vmatpush1.bf16.msra.mxu1 %v4133_v53 }
  0x5d   : > { %1068 = vmatprep.subr.bf16.mxu0 %v4140_v54  ;;  %1109 = vmatprep.subr.bf16.mxu1 %v4145_v55 }
  0x5e   : > { %756 = vmatprep.mubr.bf16.mxu0 %v4849_v18  ;;  %819 = vmatprep.mubr.bf16.mxu1 %v4849_v18 }
  0x60   : > { %1069 = vmatpush1.bf16.msra.mxu0 %v4150_v56  ;;  %1110 = vmatpush1.bf16.msra.mxu1 %v4157_v57 }
  0x61   : > { %1070 = vmatprep.subr.bf16.mxu0 %v4162_v58  ;;  %1111 = vmatprep.subr.bf16.mxu1 %v4169_v59 }
  0x63   : > { %757 = vmatmul.mubr.bf16.gmra.mxu0 %v3554_v61  ;;  %820 = vmatmul.mubr.bf16.gmra.mxu1 %v3554_v61 }
  0x64   : > { %1071 = vmatpush1.bf16.msra.mxu0 %v4174_v60  ;;  %1112 = vmatpush1.bf16.msra.mxu1 %v4186_v62 }
  0x65   : > { %1072 = vmatprep.subr.bf16.mxu0 %v4193_v63  ;;  %1113 = vmatprep.subr.bf16.mxu1 %v4198_v0 }
  0x66   : > { %766 = vmatprep.mubr.bf16.mxu0 %v4849_v18  ;;  %829 = vmatprep.mubr.bf16.mxu1 %v4849_v18 }
  0x68   : > { %1073 = vmatpush1.bf16.msra.mxu0 %v4203_v1  ;;  %1114 = vmatpush1.bf16.msra.mxu1 %v4210_v2 }
  0x69   : > { %1074 = vmatprep.subr.bf16.mxu0 %v4217_v3  ;;  %1115 = vmatprep.subr.bf16.mxu1 %v4222_v4 }
  0x6b   : > { %767 = vmatmul.mubr.bf16.gmra.mxu0 %v3567_v7  ;;  %830 = vmatmul.mubr.bf16.gmra.mxu1 %v3567_v7 }
  0x6c   : > { %1075 = vmatpush1.bf16.msra.mxu0 %v4227_v5  ;;  %1116 = vmatpush1.bf16.msra.mxu1 %v4232_v6 }
  0x6d   : > { %1076 = vmatprep.subr.bf16.mxu0 %v4242_v8  ;;  %1117 = vmatprep.subr.bf16.mxu1 %v4247_v9 }
  0x6e   : > { %1098 = vmatprep.mubr.bf16.mxu0 %v4849_v18  ;;  %1139 = vmatprep.mubr.bf16.mxu1 %v4849_v18 }
  0x70   : > { %1077 = vmatpush1.bf16.msra.mxu0 %v4256_v10  ;;  %1118 = vmatpush1.bf16.msra.mxu1 %v4261_v11 }
  0x71   : > { %1078 = vmatprep.subr.bf16.mxu0 %v4266_v12  ;;  %1119 = vmatprep.subr.bf16.mxu1 %v4271_v13 }
  0x74   : > { %1079 = vmatpush1.bf16.msra.mxu0 %v4280_v14  ;;  %1120 = vmatpush1.bf16.msra.mxu1 %v4285_v15 }
  0x75   : > { %1080 = vmatprep.subr.bf16.mxu0 %v4296_v16  ;;  %1121 = vmatprep.subr.bf16.mxu1 %v4301_v17 }
  0x78   : > { %1081 = vmatpush1.bf16.msra.mxu0 %v4308_v19  ;;  %1122 = vmatpush1.bf16.msra.mxu1 %v4313_v20 }
  0x79   : > { %1377 = vmatprep.subr.bf16.mxu0 %v4115_v49  ;;  %1418 = vmatprep.subr.bf16.mxu1 %v4120_v50 }
  0x7b   : > { %1099 = vmatmul.mubr.bf16.vlgmr.msra.gmra.mxu0 %v873_v22  ;;  %1140 = vmatmul.mubr.bf16.vlgmr.msra.gmra.mxu1 %v873_v22 }
  0x7c   : > { %1378 = vmatpush1.bf16.msra.mxu0 %v4128_v52  ;;  %1419 = vmatpush1.bf16.msra.mxu1 %v4133_v53 }
  0x7d   : > { %1379 = vmatprep.subr.bf16.mxu0 %v4140_v54  ;;  %1420 = vmatprep.subr.bf16.mxu1 %v4145_v55 }
  0x7e   : > { %1409 = vmatprep.mubr.bf16.mxu0 %v4849_v18  ;;  %1450 = vmatprep.mubr.bf16.mxu1 %v4849_v18 }
  0x80   : > { %1380 = vmatpush1.bf16.msra.mxu0 %v4150_v56  ;;  %1421 = vmatpush1.bf16.msra.mxu1 %v4157_v57 }
  0x81   : > { %1381 = vmatprep.subr.bf16.mxu0 %v4162_v58  ;;  %1422 = vmatprep.subr.bf16.mxu1 %v4169_v59 }
  0x84   : > { %1382 = vmatpush1.bf16.msra.mxu0 %v4174_v60  ;;  %1423 = vmatpush1.bf16.msra.mxu1 %v4186_v62 }
  0x85   : > { %1383 = vmatprep.subr.bf16.mxu0 %v4193_v63  ;;  %1424 = vmatprep.subr.bf16.mxu1 %v4198_v0 }
  0x88   : > { %1384 = vmatpush1.bf16.msra.mxu0 %v4203_v1  ;;  %1425 = vmatpush1.bf16.msra.mxu1 %v4210_v2 }
  0x89   : > { %1385 = vmatprep.subr.bf16.mxu0 %v4217_v3  ;;  %1426 = vmatprep.subr.bf16.mxu1 %v4222_v4 }
  0x8c   : > { %1386 = vmatpush1.bf16.msra.mxu0 %v4227_v5  ;;  %1427 = vmatpush1.bf16.msra.mxu1 %v4232_v6 }
  0x8d   : > { %1387 = vmatprep.subr.bf16.mxu0 %v4242_v8  ;;  %1428 = vmatprep.subr.bf16.mxu1 %v4247_v9 }
  0x90   : > { %1388 = vmatpush1.bf16.msra.mxu0 %v4256_v10  ;;  %1429 = vmatpush1.bf16.msra.mxu1 %v4261_v11 }
  0x91   : > { %1389 = vmatprep.subr.bf16.mxu0 %v4266_v12  ;;  %1430 = vmatprep.subr.bf16.mxu1 %v4271_v13 }
  0x94   : > { %1390 = vmatpush1.bf16.msra.mxu0 %v4280_v14  ;;  %1431 = vmatpush1.bf16.msra.mxu1 %v4285_v15 }
  0x95   : > { %1391 = vmatprep.subr.bf16.mxu0 %v4296_v16  ;;  %1432 = vmatprep.subr.bf16.mxu1 %v4301_v17 }
  0x98   : > { %1392 = vmatpush1.bf16.msra.mxu0 %v4308_v19  ;;  %1433 = vmatpush1.bf16.msra.mxu1 %v4313_v20 }
  0x99   : > { %1689 = vmatprep.subr.bf16.mxu0 %v4115_v49  ;;  %1730 = vmatprep.subr.bf16.mxu1 %v4120_v50 }
 0x11b   : > { %v748_v29 = vpop.f32.mrf.mxu0  ;;  %v4361_v30 = vpop.f32.mrf.mxu1 }
 0x11d   : > { %v750_v33 = vpop.f32.mrf.mxu0  ;;  %v813_v34 = vpop.f32.mrf.mxu1 }
 0x11f   : > { %v752_v37 = vpop.f32.mrf.mxu0  ;;  %v815_v38 = vpop.f32.mrf.mxu1 }
 0x120   : > { %v4363_v40 = vadd.f32 %v752_v37, %v519_v35  ;;  %v4365_v41 = vadd.f32 %v815_v38, %v527_v32 }
 0x121   : > { %v754_v42 = vpop.f32.mrf.mxu0  ;;  %v817_v43 = vpop.f32.mrf.mxu1 }
 0x122   : > { %v4367_v44 = vadd.f32 %v754_v42, %v523_v39  ;;  %v4369_v45 = vadd.f32 %v817_v43, %v531_v36 }
 0x123   : > { %v758_v46 = vpop.f32.mrf.mxu0  ;;  %v821_v47 = vpop.f32.mrf.mxu1 }
 0x124   : > { %v4371_v48 = vadd.f32 %v758_v46, %v519_v35  ;;  %v4373_v51 = vadd.f32 %v821_v47, %v527_v32 }
 0x125   : > { %v760_v61 = vpop.f32.mrf.mxu0  ;;  %v823_v7 = vpop.f32.mrf.mxu1 }
 0x126   : > { %4857 = vst [vmem:[#allocation15_spill] sm:$0xff] %v4373_v51  ;;  %v4375_v21 = vadd.f32 %v760_v61, %v523_v39  ;;  %v4377_v22 = vadd.f32 %v823_v7, %v531_v36 }
 0x127   : > { %v762_v23 = vpop.f32.mrf.mxu0  ;;  %v825_v24 = vpop.f32.mrf.mxu1 }
 0x128   : > { %4858 = vst [vmem:[#allocation16_spill] sm:$0xff] %v4377_v22  ;;  %v4379_v25 = vadd.f32 %v762_v23, %v519_v35  ;;  %v4381_v26 = vadd.f32 %v825_v24, %v527_v32 }
 0x129   : > { %v764_v27 = vpop.f32.mrf.mxu0  ;;  %v827_v28 = vpop.f32.mrf.mxu1 }
 0x12a   : > { %4859 = vst [vmem:[#allocation17_spill] sm:$0xff] %v4379_v25  ;;  %4860 = vst [vmem:[#allocation18_spill] sm:$0xff] %v4381_v26  ;;  %v4383_v31 = vadd.f32 %v764_v27, %v523_v39  ;;  %v4385_v37 = vadd.f32 %v827_v28, %v531_v36  ;;  %v751_v25 = vadd.f32 %v750_v33, %v523_v39 }
 0x12b   : > { %v768_v38 = vpop.f32.mrf.mxu0  ;;  %v831_v42 = vpop.f32.mrf.mxu1 }
 0x12c   : > { %4861 = vst [vmem:[#allocation19_spill] sm:$0xff] %v4383_v31  ;;  %4862 = vst [vmem:[#allocation20_spill] sm:$0xff] %v4385_v37  ;;  %v4387_v43 = vadd.f32 %v768_v38, %v519_v35  ;;  %v4389_v46 = vadd.f32 %v831_v42, %v527_v32  ;;  %v749_v42 = vadd.f32 %v748_v29, %v519_v35 }
 0x12d   : > { %v770_v47 = vpop.f32.mrf.mxu0  ;;  %v833_v61 = vpop.f32.mrf.mxu1 }
 0x12e   : > { %4863 = vst [vmem:[#allocation21_spill] sm:$0xff] %v4387_v43  ;;  %4864 = vst [vmem:[#allocation22_spill] sm:$0xff] %v4389_v46  ;;  %v4391_v7 = vadd.f32 %v770_v47, %v523_v39  ;;  %v4393_v23 = vadd.f32 %v833_v61, %v531_v36 }
 0x12f   : > { %v772_v24 = vpop.f32.mrf.mxu0  ;;  %v835_v18 = vpop.f32.mrf.mxu1 }
 0x130   : > { %4865 = vst [vmem:[#allocation23_spill] sm:$0xff] %v4391_v7  ;;  %4866 = vst [vmem:[#allocation24_spill] sm:$0xff] %v4393_v23  ;;  %v4395_v26 = vadd.f32 %v772_v24, %v519_v35  ;;  %v4397_v27 = vadd.f32 %v835_v18, %v527_v32 }
 0x131   : > { %v774_v28 = vpop.f32.mrf.mxu0  ;;  %v837_v37 = vpop.f32.mrf.mxu1 }
 0x132   : > { %4867 = vst [vmem:[#allocation25_spill] sm:$0xff] %v4395_v26  ;;  %4868 = vst [vmem:[#allocation26_spill] sm:$0xff] %v4397_v27  ;;  %v4399_v31 = vadd.f32 %v774_v28, %v523_v39  ;;  %v4401_v38 = vadd.f32 %v837_v37, %v531_v36  ;;  %v812_v28 = vadd.f32 %v4361_v30, %v527_v32 }
 0x134   : > { %4869 = vst [vmem:[#allocation27_spill] sm:$0xff] %v4399_v31  ;;  %4870 = vst [vmem:[#allocation28_spill] sm:$0xff] %v4401_v38  ;;  %v814_v38 = vadd.f32 %v813_v34, %v531_v36 }
 0x13b   : > { %v1100_v46 = vpop.f32.mrf.mxu0  ;;  %v1141_v43 = vpop.f32.mrf.mxu1 }
 0x13c   : > { %v1148_v47 = vadd.f32 %v1100_v46, %v749_v42  ;;  %v1150_v37 = vadd.f32 %v1141_v43, %v812_v28 }
 0x13d   : > { %v1102_v7 = vpop.f32.mrf.mxu0  ;;  %v1143_v61 = vpop.f32.mrf.mxu1 }
 0x13e   : > { %v3146_v23 = vmul.f32 -1.442695, %v1148_v47  ;;  %v1149_v22 = vadd.f32 %v1102_v7, %v751_v25  ;;  %v3148_v29 = vmul.f32 -1.442695, %v1150_v37  ;;  %v1151_v31 = vadd.f32 %v1143_v61, %v814_v38 }
 0x13f   : > { %v1104_v51 = vpop.f32.mrf.mxu0  ;;  %v1145_v24 = vpop.f32.mrf.mxu1  ;;  %v4871_v38 = vmov 0  }
 0x140   : > { %3634 = vpow2.f32 %v3146_v23  ;;  %v3147_v18 = vmul.f32 -1.442695, %v1149_v22  ;;  %v865_v22 = vld [vmem:[%s4842_s5] sm:$0xff] }
 0x141   : > { %v1105_v27 = vpop.f32.mrf.mxu0  ;;  %v1146_v26 = vpop.f32.mrf.mxu1 }
 0x142   : > { %3636 = vpow2.f32 %v3147_v18 }
 0x143   : > { %3638 = vpow2.f32 %v3148_v29 }
 0x14d   : > { %v3635_v35 = vpop.eup %3634 }
 0x14e   : > { %v1161_v33 = vadd.f32 1.0, %v3635_v35 }
 0x14f   : > { %v3637_v39 = vpop.eup %3636 }
 0x150   : > { %3640 = vrcp.f32 %v1161_v33  ;;  %v1162_v46 = vadd.f32 1.0, %v3637_v39  ;;  %v3639_v51 = vpop.eup %3638 }
 0x151   : > { %3642 = vtanh.f32 %v1151_v31  ;;  %v1163_v32 = vadd.f32 1.0, %v3639_v51 }
 0x152   : > { %3644 = vrcp.f32 %v1162_v46 }
 0x153   : > { %3646 = vrcp.f32 %v1163_v32 }
 0x15d   : > { %v3641_v25 = vpop.eup %3640 }
 0x15e   : > { %v3643_v26 = vpop.eup %3642 }
 0x15f   : > { %v3645_v30 = vpop.eup %3644  ;;  %v1172_v36 = vmul.f32 %v3643_v26, %v3641_v25 }
 0x160   : > { %v1171_v34 = vmul.f32 %v3645_v30, %v865_v22  ;;  %v3647_v7 = vpop.eup %3646 }
 0x162   : > { %v4407_v43 = vadd.f32 %v1172_v36, %v1171_v34 }
 0x164   : > { %3648 = vtanh.f32 %v4407_v43 }
 0x171   : > { %v3649_v23 = vpop.eup %3648 }
 0x172   : > { %v4410_v31 = vmul.f32 %v3649_v23, %v3647_v7 }
 0x174   : > { %v1184_v27 = vpack.c.bf16 %v4410_v31, %v4410_v31 }
 0x176   : > { %1410 = vmatmul.mubr.bf16.vlgmr.msra.gmra.mxu0 %v1184_v27  ;;  %1451 = vmatmul.mubr.bf16.vlgmr.msra.gmra.mxu1 %v1184_v27 }
 0x177   : > { %1690 = vmatpush1.bf16.msra.mxu0 %v4128_v52  ;;  %1731 = vmatpush1.bf16.msra.mxu1 %v4133_v53 }
 0x178   : > { %1691 = vmatprep.subr.bf16.mxu0 %v4140_v54  ;;  %1732 = vmatprep.subr.bf16.mxu1 %v4145_v55 }
 0x179   : > { %1721 = vmatprep.mubr.bf16.mxu0 %v4871_v38  ;;  %1762 = vmatprep.mubr.bf16.mxu1 %v4871_v38 }
 0x17b   : > { %1692 = vmatpush1.bf16.msra.mxu0 %v4150_v56  ;;  %1733 = vmatpush1.bf16.msra.mxu1 %v4157_v57 }
 0x17c   : > { %1693 = vmatprep.subr.bf16.mxu0 %v4162_v58  ;;  %1734 = vmatprep.subr.bf16.mxu1 %v4169_v59 }
 0x17f   : > { %1694 = vmatpush1.bf16.msra.mxu0 %v4174_v60  ;;  %1735 = vmatpush1.bf16.msra.mxu1 %v4186_v62 }
 0x180   : > { %1695 = vmatprep.subr.bf16.mxu0 %v4193_v63  ;;  %1736 = vmatprep.subr.bf16.mxu1 %v4198_v0 }
 0x183   : > { %1696 = vmatpush1.bf16.msra.mxu0 %v4203_v1  ;;  %1737 = vmatpush1.bf16.msra.mxu1 %v4210_v2 }
 0x184   : > { %1697 = vmatprep.subr.bf16.mxu0 %v4217_v3  ;;  %1738 = vmatprep.subr.bf16.mxu1 %v4222_v4 }
 0x187   : > { %1698 = vmatpush1.bf16.msra.mxu0 %v4227_v5  ;;  %1739 = vmatpush1.bf16.msra.mxu1 %v4232_v6 }
 0x188   : > { %1699 = vmatprep.subr.bf16.mxu0 %v4242_v8  ;;  %1740 = vmatprep.subr.bf16.mxu1 %v4247_v9 }
 0x18b   : > { %1700 = vmatpush1.bf16.msra.mxu0 %v4256_v10  ;;  %1741 = vmatpush1.bf16.msra.mxu1 %v4261_v11 }
 0x18c   : > { %1701 = vmatprep.subr.bf16.mxu0 %v4266_v12  ;;  %1742 = vmatprep.subr.bf16.mxu1 %v4271_v13 }
 0x18f   : > { %1702 = vmatpush1.bf16.msra.mxu0 %v4280_v14  ;;  %1743 = vmatpush1.bf16.msra.mxu1 %v4285_v15 }
 0x190   : > { %1703 = vmatprep.subr.bf16.mxu0 %v4296_v16  ;;  %1744 = vmatprep.subr.bf16.mxu1 %v4301_v17 }
 0x193   : > { %1704 = vmatpush1.bf16.msra.mxu0 %v4308_v19  ;;  %1745 = vmatpush1.bf16.msra.mxu1 %v4313_v20 }
 0x194   : > { %2001 = vmatprep.subr.bf16.mxu0 %v4115_v49  ;;  %2042 = vmatprep.subr.bf16.mxu1 %v4120_v50 }
 0x236   : > { %v1411_v42 = vpop.f32.mrf.mxu0  ;;  %v1452_v47 = vpop.f32.mrf.mxu1 }
 0x237   : > { %v1459_v61 = vadd.f32 %v1411_v42, %v4363_v40  ;;  %v1461_v49 = vadd.f32 %v1452_v47, %v4365_v41 }
 0x238   : > { %v1413_v24 = vpop.f32.mrf.mxu0  ;;  %v1454_v18 = vpop.f32.mrf.mxu1 }
 0x239   : > { %v3181_v28 = vmul.f32 -1.442695, %v1459_v61  ;;  %v1460_v37 = vadd.f32 %v1413_v24, %v4367_v44  ;;  %v3183_v51 = vmul.f32 -1.442695, %v1461_v49  ;;  %v1462_v50 = vadd.f32 %v1454_v18, %v4369_v45  ;;  %v4511_v24 = vld [vmem:[%s4839_s2 + $0xec] ss:$16 sps:$4 sm:$0xff]  }
 0x23a   : > { %v1415_v29 = vpop.f32.mrf.mxu0  ;;  %v1456_v35 = vpop.f32.mrf.mxu1  ;;  %v4516_v18 = vld [vmem:[%s4839_s2 + $0xe0] ss:$16 sps:$4 sm:$0xff]  }
 0x23b   : > { %3650 = vpow2.f32 %v3181_v28  ;;  %v3182_v33 = vmul.f32 -1.442695, %v1460_v37  ;;  %v4521_v28 = vld [vmem:[%s4839_s2 + $0xe8] ss:$16 sps:$4 sm:$0xff]   ;;  %v4530_v37 = vld [vmem:[%s4839_s2 + $0xc4] ss:$16 sps:$4 sm:$0xff]  }
 0x23c   : > { %v1416_v39 = vpop.f32.mrf.mxu0  ;;  %v1457_v46 = vpop.f32.mrf.mxu1  ;;  %v4535_v29 = vld [vmem:[%s4839_s2 + $0xcc] ss:$16 sps:$4 sm:$0xff]   ;;  %v4540_v35 = vld [vmem:[%s4839_s2 + $0xc0] ss:$16 sps:$4 sm:$0xff]  }
 0x23d   : > { %3652 = vpow2.f32 %v3182_v33  ;;  %v4545_v33 = vld [vmem:[%s4839_s2 + $0xc8] ss:$16 sps:$4 sm:$0xff]   ;;  %v4554_v39 = vld [vmem:[%s4839_s2 + $0xa4] ss:$16 sps:$4 sm:$0xff]   ;;  %v4559_v46 = vld [vmem:[%s4839_s2 + $0xac] ss:$16 sps:$4 sm:$0xff]  }
 0x23e   : > { %3654 = vpow2.f32 %v3183_v51  ;;  %v4564_v49 = vld [vmem:[%s4839_s2 + $0xa0] ss:$16 sps:$4 sm:$0xff]   ;;  %v4569_v51 = vld [vmem:[%s4839_s2 + $0xa8] ss:$16 sps:$4 sm:$0xff]  }
 0x23f   : > { %3656 = vtanh.f32 %v1462_v50  ;;  %v4578_v50 = vld [vmem:[%s4839_s2 + $0x84] ss:$16 sps:$4 sm:$0xff]  }
 0x248   : > { %v3651_v25 = vpop.eup %3650 }
 0x249   : > { %v1472_v22 = vadd.f32 1.0, %v3651_v25  ;;  %v4583_v25 = vld [vmem:[%s4839_s2 + $0x8c] ss:$16 sps:$4 sm:$0xff]  }
 0x24a   : > { %v3653_v40 = vpop.eup %3652 }
 0x24b   : > { %3658 = vrcp.f32 %v1472_v22  ;;  %v1473_v26 = vadd.f32 1.0, %v3653_v40  ;;  %v3655_v44 = vpop.eup %3654  ;;  %v4588_v22 = vld [vmem:[%s4839_s2 + $0x80] ss:$16 sps:$4 sm:$0xff]   ;;  %v4593_v40 = vld [vmem:[%s4839_s2 + $0x88] ss:$16 sps:$4 sm:$0xff]  }
 0x24c   : > { %v3657_v30 = vpop.eup %3656  ;;  %v1474_v7 = vadd.f32 1.0, %v3655_v44  ;;  %v4605_v44 = vld [vmem:[%s4839_s2 + $0x6c] ss:$16 sps:$4 sm:$0xff]  }
 0x24d   : > { %3660 = vrcp.f32 %v1473_v26  ;;  %v4600_v26 = vld [vmem:[%s4839_s2 + $0x64] ss:$16 sps:$4 sm:$0xff]  }
 0x24e   : > { %3662 = vrcp.f32 %v1474_v7  ;;  %v4636_v7 = vld [vmem:[%s4839_s2 + $0x40] ss:$16 sps:$4 sm:$0xff]  }
 0x258   : > { %v3659_v32 = vpop.eup %3658 }
 0x259   : > { %v1483_v34 = vmul.f32 %v3659_v32, %v3657_v30  ;;  %v4612_v30 = vld [vmem:[%s4839_s2 + $0x60] ss:$16 sps:$4 sm:$0xff]   ;;  %v4617_v32 = vld [vmem:[%s4839_s2 + $0x68] ss:$16 sps:$4 sm:$0xff]  }
 0x25a   : > { %v3661_v36 = vpop.eup %3660 }
 0x25b   : > { %v1482_v23 = vmul.f32 %v3661_v36, %v4407_v43  ;;  %v3663_v45 = vpop.eup %3662  ;;  %v4629_v36 = vld [vmem:[%s4839_s2 + $0x4c] ss:$16 sps:$4 sm:$0xff]  }
 0x25d   : > { %v4453_v41 = vadd.f32 %v1483_v34, %v1482_v23  ;;  %v4624_v34 = vld [vmem:[%s4839_s2 + $0x44] ss:$16 sps:$4 sm:$0xff]   ;;  %v4641_v23 = vld [vmem:[%s4839_s2 + $0x48] ss:$16 sps:$4 sm:$0xff]  }
 0x25f   : > { %3664 = vtanh.f32 %v4453_v41 }
 0x26c   : > { %v3665_v27 = vpop.eup %3664 }
 0x26d   : > { %v1486_v42 = vmul.f32 %v3665_v27, %v3663_v45  ;;  %v4653_v45 = vld [vmem:[%s4839_s2 + $0x2c] ss:$16 sps:$4 sm:$0xff]   ;;  %v4660_v27 = vld [vmem:[%s4839_s2 + $0x20] ss:$16 sps:$4 sm:$0xff]  }
 0x26f   : > { %v1496_v47 = vpack.c.bf16 %v1486_v42, %v1486_v42  ;;  %v3358_v61 = vpack.c.bf16 %v1486_v42, %v4410_v31  ;;  %v4506_v31 = vld [vmem:[%s4839_s2 + $0xe4] ss:$16 sps:$4 sm:$0xff]   ;;  %v4665_v42 = vld [vmem:[%s4839_s2 + $0x28] ss:$16 sps:$4 sm:$0xff]  }
 0x271   : > { %1722 = vmatmul.mubr.bf16.vlgmr.msra.gmra.mxu0 %v1496_v47  ;;  %3359 = vst [vmem:[#allocation4] sm:$0xff] %v3358_v61   ;;  %1763 = vmatmul.mubr.bf16.vlgmr.msra.gmra.mxu1 %v1496_v47  ;;  %v4672_v47 = vld [vmem:[%s4839_s2 + $0x4] ss:$16 sps:$4 sm:$0xff]   ;;  %v4677_v61 = vld [vmem:[%s4839_s2 + $0xc] ss:$16 sps:$4 sm:$0xff]  }
 0x272   : > { %2002 = vmatpush1.bf16.msra.mxu0 %v4128_v52  ;;  %2043 = vmatpush1.bf16.msra.mxu1 %v4133_v53 }
 0x273   : > { %2003 = vmatprep.subr.bf16.mxu0 %v4140_v54  ;;  %2044 = vmatprep.subr.bf16.mxu1 %v4145_v55 }
 0x274   : > { %2033 = vmatprep.mubr.bf16.mxu0 %v4871_v38  ;;  %2074 = vmatprep.mubr.bf16.mxu1 %v4871_v38 }
 0x276   : > { %2004 = vmatpush1.bf16.msra.mxu0 %v4150_v56  ;;  %2045 = vmatpush1.bf16.msra.mxu1 %v4157_v57 }
 0x277   : > { %2005 = vmatprep.subr.bf16.mxu0 %v4162_v58  ;;  %2046 = vmatprep.subr.bf16.mxu1 %v4169_v59 }
 0x27a   : > { %2006 = vmatpush1.bf16.msra.mxu0 %v4174_v60  ;;  %2047 = vmatpush1.bf16.msra.mxu1 %v4186_v62 }
 0x27b   : > { %2007 = vmatprep.subr.bf16.mxu0 %v4193_v63  ;;  %2048 = vmatprep.subr.bf16.mxu1 %v4198_v0 }
 0x27e   : > { %2008 = vmatpush1.bf16.msra.mxu0 %v4203_v1  ;;  %2049 = vmatpush1.bf16.msra.mxu1 %v4210_v2  ;;  %v4872_v1 = vld [vmem:[#allocation15_spill] sm:$0xff] }
 0x27f   : > { %2009 = vmatprep.subr.bf16.mxu0 %v4217_v3  ;;  %2050 = vmatprep.subr.bf16.mxu1 %v4222_v4  ;;  %v4873_v4 = vld [vmem:[#allocation16_spill] sm:$0xff] }
 0x282   : > { %2010 = vmatpush1.bf16.msra.mxu0 %v4227_v5  ;;  %2051 = vmatpush1.bf16.msra.mxu1 %v4232_v6 }
 0x283   : > { %2011 = vmatprep.subr.bf16.mxu0 %v4242_v8  ;;  %2052 = vmatprep.subr.bf16.mxu1 %v4247_v9 }
 0x286   : > { %2012 = vmatpush1.bf16.msra.mxu0 %v4256_v10  ;;  %2053 = vmatpush1.bf16.msra.mxu1 %v4261_v11 }
 0x287   : > { %2013 = vmatprep.subr.bf16.mxu0 %v4266_v12  ;;  %2054 = vmatprep.subr.bf16.mxu1 %v4271_v13 }
 0x28a   : > { %2014 = vmatpush1.bf16.msra.mxu0 %v4280_v14  ;;  %2055 = vmatpush1.bf16.msra.mxu1 %v4285_v15 }
 0x28b   : > { %2015 = vmatprep.subr.bf16.mxu0 %v4296_v16  ;;  %2056 = vmatprep.subr.bf16.mxu1 %v4301_v17 }
 0x28e   : > { %2016 = vmatpush1.bf16.msra.mxu0 %v4308_v19  ;;  %2057 = vmatpush1.bf16.msra.mxu1 %v4313_v20 }
 0x28f   : > { %2313 = vmatprep.subr.bf16.mxu0 %v4506_v31  ;;  %2354 = vmatprep.subr.bf16.mxu1 %v4511_v24 }
 0x331   : > { %v1723_v52 = vpop.f32.mrf.mxu0  ;;  %v1764_v53 = vpop.f32.mrf.mxu1 }
 0x332   : > { %v1771_v54 = vadd.f32 %v1723_v52, %v4371_v48  ;;  %v1773_v2 = vadd.f32 %v1764_v53, %v4872_v1  ;;  %v4684_v52 = vld [vmem:[%s4839_s2] ss:$16 sps:$4 sm:$0xff]   ;;  %v4689_v53 = vld [vmem:[%s4839_s2 + $0x8] ss:$16 sps:$4 sm:$0xff]  }
 0x333   : > { %v1725_v55 = vpop.f32.mrf.mxu0  ;;  %v1766_v56 = vpop.f32.mrf.mxu1 }
 0x334   : > { %v3216_v57 = vmul.f32 -1.442695, %v1771_v54  ;;  %v1772_v58 = vadd.f32 %v1725_v55, %v4375_v21  ;;  %v3218_v3 = vmul.f32 -1.442695, %v1773_v2  ;;  %v1774_v5 = vadd.f32 %v1766_v56, %v4873_v4  ;;  %v4874_v56 = vld [vmem:[#allocation17_spill] sm:$0xff] }
 0x335   : > { %v1727_v59 = vpop.f32.mrf.mxu0  ;;  %v1768_v60 = vpop.f32.mrf.mxu1 }
 0x336   : > { %3666 = vpow2.f32 %v3216_v57  ;;  %v3217_v62 = vmul.f32 -1.442695, %v1772_v58 }
 0x337   : > { %v1728_v63 = vpop.f32.mrf.mxu0  ;;  %v1769_v0 = vpop.f32.mrf.mxu1 }
 0x338   : > { %3668 = vpow2.f32 %v3217_v62  ;;  %v4875_v62 = vld [vmem:[#allocation19_spill] sm:$0xff] }
 0x339   : > { %3670 = vpow2.f32 %v3218_v3 }
 0x33a   : > { %3672 = vtanh.f32 %v1774_v5  ;;  %v4876_v5 = vld [vmem:[#allocation18_spill] sm:$0xff] }
 0x343   : > { %v3667_v6 = vpop.eup %3666 }
 0x344   : > { %v1784_v8 = vadd.f32 1.0, %v3667_v6 }
 0x345   : > { %v3669_v9 = vpop.eup %3668 }
 0x346   : > { %3674 = vrcp.f32 %v1784_v8  ;;  %v1785_v10 = vadd.f32 1.0, %v3669_v9  ;;  %v3671_v11 = vpop.eup %3670  ;;  %v4877_v9 = vld [vmem:[#allocation20_spill] sm:$0xff] }
 0x347   : > { %v3673_v12 = vpop.eup %3672  ;;  %v1786_v16 = vadd.f32 1.0, %v3671_v11 }
 0x348   : > { %3676 = vrcp.f32 %v1785_v10 }
 0x349   : > { %3678 = vrcp.f32 %v1786_v16 }
 0x353   : > { %v3675_v13 = vpop.eup %3674 }
 0x354   : > { %v1795_v14 = vmul.f32 %v3675_v13, %v3673_v12 }
 0x355   : > { %v3677_v15 = vpop.eup %3676 }
 0x356   : > { %v1794_v17 = vmul.f32 %v3677_v15, %v4453_v41  ;;  %v3679_v20 = vpop.eup %3678  ;;  %v4648_v41 = vld [vmem:[%s4839_s2 + $0x24] ss:$16 sps:$4 sm:$0xff]  }
 0x358   : > { %v4494_v19 = vadd.f32 %v1795_v14, %v1794_v17 }
 0x35a   : > { %3680 = vtanh.f32 %v4494_v19 }
 0x367   : > { %v3681_v48 = vpop.eup %3680 }
 0x368   : > { %v4497_v21 = vmul.f32 %v3681_v48, %v3679_v20 }
 0x36a   : > { %v1808_v43 = vpack.c.bf16 %v4497_v21, %v4497_v21 }
 0x36c   : > { %2034 = vmatmul.mubr.bf16.vlgmr.msra.gmra.mxu0 %v1808_v43  ;;  %2075 = vmatmul.mubr.bf16.vlgmr.msra.gmra.mxu1 %v1808_v43 }
 0x36d   : > { %2345 = vmatprep.mubr.bf16.mxu0 %v4871_v38  ;;  %2386 = vmatprep.mubr.bf16.mxu1 %v4871_v38 }
 0x36e   : > { %2314 = vmatpush1.bf16.msra.mxu0 %v4516_v18  ;;  %2355 = vmatpush1.bf16.msra.mxu1 %v4521_v28 }
 0x36f   : > { %2315 = vmatprep.subr.bf16.mxu0 %v4530_v37  ;;  %2356 = vmatprep.subr.bf16.mxu1 %v4535_v29 }
 0x372   : > { %2316 = vmatpush1.bf16.msra.mxu0 %v4540_v35  ;;  %2357 = vmatpush1.bf16.msra.mxu1 %v4545_v33 }
 0x373   : > { %2317 = vmatprep.subr.bf16.mxu0 %v4554_v39  ;;  %2358 = vmatprep.subr.bf16.mxu1 %v4559_v46 }
 0x376   : > { %2318 = vmatpush1.bf16.msra.mxu0 %v4564_v49  ;;  %2359 = vmatpush1.bf16.msra.mxu1 %v4569_v51 }
 0x377   : > { %2319 = vmatprep.subr.bf16.mxu0 %v4578_v50  ;;  %2360 = vmatprep.subr.bf16.mxu1 %v4583_v25 }
 0x37a   : > { %2320 = vmatpush1.bf16.msra.mxu0 %v4588_v22  ;;  %2361 = vmatpush1.bf16.msra.mxu1 %v4593_v40 }
 0x37b   : > { %2321 = vmatprep.subr.bf16.mxu0 %v4600_v26  ;;  %2362 = vmatprep.subr.bf16.mxu1 %v4605_v44 }
 0x37e   : > { %2322 = vmatpush1.bf16.msra.mxu0 %v4612_v30  ;;  %2363 = vmatpush1.bf16.msra.mxu1 %v4617_v32 }
 0x37f   : > { %2323 = vmatprep.subr.bf16.mxu0 %v4624_v34  ;;  %2364 = vmatprep.subr.bf16.mxu1 %v4629_v36 }
 0x382   : > { %2324 = vmatpush1.bf16.msra.mxu0 %v4636_v7  ;;  %2365 = vmatpush1.bf16.msra.mxu1 %v4641_v23 }
 0x383   : > { %2325 = vmatprep.subr.bf16.mxu0 %v4648_v41  ;;  %2366 = vmatprep.subr.bf16.mxu1 %v4653_v45 }
 0x386   : > { %2326 = vmatpush1.bf16.msra.mxu0 %v4660_v27  ;;  %2367 = vmatpush1.bf16.msra.mxu1 %v4665_v42 }
 0x387   : > { %2327 = vmatprep.subr.bf16.mxu0 %v4672_v47  ;;  %2368 = vmatprep.subr.bf16.mxu1 %v4677_v61 }
 0x38a   : > { %2328 = vmatpush1.bf16.msra.mxu0 %v4684_v52  ;;  %2369 = vmatpush1.bf16.msra.mxu1 %v4689_v53 }
 0x38b   : > { %2625 = vmatprep.subr.bf16.mxu0 %v4506_v31  ;;  %2666 = vmatprep.subr.bf16.mxu1 %v4511_v24 }
 0x42c   : > { %v2035_v54 = vpop.f32.mrf.mxu0  ;;  %v2076_v55 = vpop.f32.mrf.mxu1 }
 0x42d   : > { %v2083_v57 = vadd.f32 %v2035_v54, %v4874_v56  ;;  %v2085_v6 = vadd.f32 %v2076_v55, %v4876_v5  ;;  %v4883_v5 = vld [vmem:[#allocation27_spill] sm:$0xff] }
 0x42e   : > { %v2037_v58 = vpop.f32.mrf.mxu0  ;;  %v2078_v59 = vpop.f32.mrf.mxu1 }
 0x42f   : > { %v3251_v60 = vmul.f32 -1.442695, %v2083_v57  ;;  %v2084_v63 = vadd.f32 %v2037_v58, %v4875_v62  ;;  %v3253_v8 = vmul.f32 -1.442695, %v2085_v6  ;;  %v2086_v10 = vadd.f32 %v2078_v59, %v4877_v9 }
 0x430   : > { %v2039_v0 = vpop.f32.mrf.mxu0  ;;  %v2080_v1 = vpop.f32.mrf.mxu1 }
 0x431   : > { %3682 = vpow2.f32 %v3251_v60  ;;  %v3252_v2 = vmul.f32 -1.442695, %v2084_v63  ;;  %v4882_v0 = vld [vmem:[#allocation25_spill] sm:$0xff] }
 0x432   : > { %v2040_v3 = vpop.f32.mrf.mxu0  ;;  %v2081_v4 = vpop.f32.mrf.mxu1 }
 0x433   : > { %3684 = vpow2.f32 %v3252_v2 }
 0x434   : > { %3686 = vpow2.f32 %v3253_v8 }
 0x435   : > { %3688 = vtanh.f32 %v2086_v10 }
 0x43e   : > { %v3683_v11 = vpop.eup %3682 }
 0x43f   : > { %v2096_v12 = vadd.f32 1.0, %v3683_v11 }
 0x440   : > { %v3685_v13 = vpop.eup %3684 }
 0x441   : > { %3690 = vrcp.f32 %v2096_v12  ;;  %v2097_v14 = vadd.f32 1.0, %v3685_v13  ;;  %v3687_v15 = vpop.eup %3686  ;;  %v4884_v13 = vld [vmem:[#allocation26_spill] sm:$0xff] }
 0x442   : > { %v3689_v16 = vpop.eup %3688  ;;  %v2098_v43 = vadd.f32 1.0, %v3687_v15 }
 0x443   : > { %3692 = vrcp.f32 %v2097_v14 }
 0x444   : > { %3694 = vrcp.f32 %v2098_v43 }
 0x44e   : > { %v3691_v17 = vpop.eup %3690 }
 0x44f   : > { %v2107_v20 = vmul.f32 %v3691_v17, %v3689_v16  ;;  %v4885_v16 = vld [vmem:[#allocation28_spill] sm:$0xff] }
 0x450   : > { %v3693_v48 = vpop.eup %3692 }
 0x451   : > { %v2106_v31 = vmul.f32 %v3693_v48, %v4494_v19  ;;  %v3695_v54 = vpop.eup %3694 }
 0x453   : > { %v4702_v24 = vadd.f32 %v2107_v20, %v2106_v31 }
 0x455   : > { %3696 = vtanh.f32 %v4702_v24 }
 0x462   : > { %v3697_v55 = vpop.eup %3696 }
 0x463   : > { %v2110_v56 = vmul.f32 %v3697_v55, %v3695_v54 }
 0x465   : > { %v2120_v57 = vpack.c.bf16 %v2110_v56, %v2110_v56  ;;  %v3363_v58 = vpack.c.bf16 %v2110_v56, %v4497_v21  ;;  %v4878_v21 = vld [vmem:[#allocation21_spill] sm:$0xff] }
 0x467   : > { %2346 = vmatmul.mubr.bf16.vlgmr.msra.gmra.mxu0 %v2120_v57  ;;  %3370 = vst [vmem:[#allocation4 + $0x8] sm:$0xff] %v3363_v58   ;;  %2387 = vmatmul.mubr.bf16.vlgmr.msra.gmra.mxu1 %v2120_v57 }
 0x468   : > { %2626 = vmatpush1.bf16.msra.mxu0 %v4516_v18  ;;  %2667 = vmatpush1.bf16.msra.mxu1 %v4521_v28 }
 0x469   : > { %2627 = vmatprep.subr.bf16.mxu0 %v4530_v37  ;;  %2668 = vmatprep.subr.bf16.mxu1 %v4535_v29 }
 0x46a   : > { %2657 = vmatprep.mubr.bf16.mxu0 %v4871_v38  ;;  %2698 = vmatprep.mubr.bf16.mxu1 %v4871_v38 }
 0x46c   : > { %2628 = vmatpush1.bf16.msra.mxu0 %v4540_v35  ;;  %2669 = vmatpush1.bf16.msra.mxu1 %v4545_v33  ;;  %v4879_v35 = vld [vmem:[#allocation23_spill] sm:$0xff] }
 0x46d   : > { %2629 = vmatprep.subr.bf16.mxu0 %v4554_v39  ;;  %2670 = vmatprep.subr.bf16.mxu1 %v4559_v46 }
 0x470   : > { %2630 = vmatpush1.bf16.msra.mxu0 %v4564_v49  ;;  %2671 = vmatpush1.bf16.msra.mxu1 %v4569_v51 }
 0x471   : > { %2631 = vmatprep.subr.bf16.mxu0 %v4578_v50  ;;  %2672 = vmatprep.subr.bf16.mxu1 %v4583_v25  ;;  %v4880_v25 = vld [vmem:[#allocation22_spill] sm:$0xff] }
 0x474   : > { %2632 = vmatpush1.bf16.msra.mxu0 %v4588_v22  ;;  %2673 = vmatpush1.bf16.msra.mxu1 %v4593_v40 }
 0x475   : > { %2633 = vmatprep.subr.bf16.mxu0 %v4600_v26  ;;  %2674 = vmatprep.subr.bf16.mxu1 %v4605_v44  ;;  %v4881_v26 = vld [vmem:[#allocation24_spill] sm:$0xff] }
 0x478   : > { %2634 = vmatpush1.bf16.msra.mxu0 %v4612_v30  ;;  %2675 = vmatpush1.bf16.msra.mxu1 %v4617_v32 }
 0x479   : > { %2635 = vmatprep.subr.bf16.mxu0 %v4624_v34  ;;  %2676 = vmatprep.subr.bf16.mxu1 %v4629_v36 }
 0x47c   : > { %2636 = vmatpush1.bf16.msra.mxu0 %v4636_v7  ;;  %2677 = vmatpush1.bf16.msra.mxu1 %v4641_v23 }
 0x47d   : > { %2637 = vmatprep.subr.bf16.mxu0 %v4648_v41  ;;  %2678 = vmatprep.subr.bf16.mxu1 %v4653_v45 }
 0x480   : > { %2638 = vmatpush1.bf16.msra.mxu0 %v4660_v27  ;;  %2679 = vmatpush1.bf16.msra.mxu1 %v4665_v42 }
 0x481   : > { %2639 = vmatprep.subr.bf16.mxu0 %v4672_v47  ;;  %2680 = vmatprep.subr.bf16.mxu1 %v4677_v61 }
 0x484   : > { %2640 = vmatpush1.bf16.msra.mxu0 %v4684_v52  ;;  %2681 = vmatpush1.bf16.msra.mxu1 %v4689_v53 }
 0x527   : > { %v2347_v38 = vpop.f32.mrf.mxu0  ;;  %v2388_v19 = vpop.f32.mrf.mxu1 }
 0x528   : > { %v2395_v18 = vadd.f32 %v2347_v38, %v4878_v21  ;;  %v2397_v22 = vadd.f32 %v2388_v19, %v4880_v25 }
 0x529   : > { %v2349_v28 = vpop.f32.mrf.mxu0  ;;  %v2390_v37 = vpop.f32.mrf.mxu1 }
 0x52a   : > { %v3286_v29 = vmul.f32 -1.442695, %v2395_v18  ;;  %v2396_v33 = vadd.f32 %v2349_v28, %v4879_v35  ;;  %v3288_v40 = vmul.f32 -1.442695, %v2397_v22  ;;  %v2398_v44 = vadd.f32 %v2390_v37, %v4881_v26 }
 0x52b   : > { %v2351_v39 = vpop.f32.mrf.mxu0  ;;  %v2392_v46 = vpop.f32.mrf.mxu1 }
 0x52c   : > { %3698 = vpow2.f32 %v3286_v29  ;;  %v3287_v49 = vmul.f32 -1.442695, %v2396_v33 }
 0x52d   : > { %v2352_v51 = vpop.f32.mrf.mxu0  ;;  %v2393_v50 = vpop.f32.mrf.mxu1 }
 0x52e   : > { %3700 = vpow2.f32 %v3287_v49 }
 0x52f   : > { %3702 = vpow2.f32 %v3288_v40 }
 0x530   : > { %3704 = vtanh.f32 %v2398_v44 }
 0x539   : > { %v3699_v30 = vpop.eup %3698 }
 0x53a   : > { %v2408_v32 = vadd.f32 1.0, %v3699_v30 }
 0x53b   : > { %v3701_v34 = vpop.eup %3700 }
 0x53c   : > { %3706 = vrcp.f32 %v2408_v32  ;;  %v2409_v36 = vadd.f32 1.0, %v3701_v34  ;;  %v3703_v7 = vpop.eup %3702 }
 0x53d   : > { %v3705_v23 = vpop.eup %3704  ;;  %v2410_v42 = vadd.f32 1.0, %v3703_v7 }
 0x53e   : > { %3708 = vrcp.f32 %v2409_v36 }
 0x53f   : > { %3710 = vrcp.f32 %v2410_v42 }
 0x549   : > { %v3707_v41 = vpop.eup %3706 }
 0x54a   : > { %v2419_v45 = vmul.f32 %v3707_v41, %v3705_v23 }
 0x54b   : > { %v3709_v27 = vpop.eup %3708 }
 0x54c   : > { %v2418_v47 = vmul.f32 %v3709_v27, %v4702_v24  ;;  %v3711_v52 = vpop.eup %3710 }
 0x54e   : > { %v2420_v61 = vadd.f32 %v2419_v45, %v2418_v47 }
 0x550   : > { %3712 = vtanh.f32 %v2420_v61 }
 0x55d   : > { %v3713_v53 = vpop.eup %3712 }
 0x55e   : > { %v2422_v59 = vmul.f32 %v3713_v53, %v3711_v52 }
 0x560   : > { %v2432_v60 = vpack.c.bf16 %v2422_v59, %v2422_v59 }
 0x562   : > { %2658 = vmatmul.mubr.bf16.vlgmr.msra.gmra.mxu0 %v2432_v60  ;;  %2699 = vmatmul.mubr.bf16.vlgmr.msra.gmra.mxu1 %v2432_v60 }
 0x622   : > { %v2659_v62 = vpop.f32.mrf.mxu0  ;;  %v2700_v63 = vpop.f32.mrf.mxu1 }
 0x623   : > { %v2707_v1 = vadd.f32 %v2659_v62, %v4882_v0  ;;  %v2709_v14 = vadd.f32 %v2700_v63, %v4884_v13 }
 0x624   : > { %v2661_v2 = vpop.f32.mrf.mxu0  ;;  %v2702_v3 = vpop.f32.mrf.mxu1 }
 0x625   : > { %v3321_v4 = vmul.f32 -1.442695, %v2707_v1  ;;  %v2708_v6 = vadd.f32 %v2661_v2, %v4883_v5  ;;  %v3323_v15 = vmul.f32 -1.442695, %v2709_v14  ;;  %v2710_v17 = vadd.f32 %v2702_v3, %v4885_v16 }
 0x626   : > { %v2663_v8 = vpop.f32.mrf.mxu0  ;;  %v2704_v9 = vpop.f32.mrf.mxu1 }
 0x627   : > { %3714 = vpow2.f32 %v3321_v4  ;;  %v3322_v10 = vmul.f32 -1.442695, %v2708_v6 }
 0x628   : > { %v2664_v11 = vpop.f32.mrf.mxu0  ;;  %v2705_v12 = vpop.f32.mrf.mxu1 }
 0x629   : > { %3716 = vpow2.f32 %v3322_v10 }
 0x62a   : > { %3718 = vpow2.f32 %v3323_v15 }
 0x62b   : > { %3720 = vtanh.f32 %v2710_v17 }
 0x634   : > { %v3715_v20 = vpop.eup %3714 }
 0x635   : > { %v2720_v48 = vadd.f32 1.0, %v3715_v20 }
 0x636   : > { %v3717_v43 = vpop.eup %3716 }
 0x637   : > { %3722 = vrcp.f32 %v2720_v48  ;;  %v2721_v31 = vadd.f32 1.0, %v3717_v43  ;;  %v3719_v24 = vpop.eup %3718 }
 0x638   : > { %v3721_v54 = vpop.eup %3720  ;;  %v2722_v58 = vadd.f32 1.0, %v3719_v24 }
 0x639   : > { %3724 = vrcp.f32 %v2721_v31 }
 0x63a   : > { %3726 = vrcp.f32 %v2722_v58 }
 0x644   : > { %v3723_v55 = vpop.eup %3722 }
 0x645   : > { %v2731_v56 = vmul.f32 %v3723_v55, %v3721_v54 }
 0x646   : > { %v3725_v57 = vpop.eup %3724 }
 0x647   : > { %v2730_v38 = vmul.f32 %v3725_v57, %v2420_v61  ;;  %v3727_v21 = vpop.eup %3726 }
 0x649   : > { %v2732_v19 = vadd.f32 %v2731_v56, %v2730_v38 }
 0x64b   : > { %3728 = vtanh.f32 %v2732_v19  ;;  %2738 = vst [vmem:[#allocation10] sm:$0xff] %v2732_v19 }
 0x658   : > { %v3729_v18 = vpop.eup %3728 }
 0x659   : > { %v2734_v28 = vmul.f32 %v3729_v18, %v3727_v21 }
 0x65b   : > { %2737 = vst [vmem:[#allocation8] sm:$0xff] %v2734_v28  ;;  %v3368_v37 = vpack.c.bf16 %v2734_v28, %v2422_v59 }
 0x65d   : > { %3371 = vst [vmem:[#allocation4 + $0x10] sm:$0xff] %v3368_v37  }
 0x65e PF: > { %v3730_v29 = vld [vmem:[%s4009_s28 + $0x38] sm:$0xff]   ;;  %v3856_v35 = vmov 0.0   ;;  %v3731_v33 = vld [vmem:[%s4009_s28 + $0x30] sm:$0xff]   ;;  %vm3857_vm0 = vmmov 0   ;;  %v3732_v39 = vld [vmem:[%s4009_s28 + $0x28] sm:$0xff]   ;;  %s3858_s18 = smov [#allocation8]  }
 0x65f   : > { %3411 = vmatprep.subr.bf16.mxu1 %v3856_v35  ;;  %3383 = vmatprep.subr.bf16.mxu0 %v3856_v35  ;;  %v3733_v46 = vld [vmem:[%s4009_s28 + $0x20] sm:$0xff]   ;;  %v3734_v49 = vld [vmem:[%s4009_s28 + $0x18] sm:$0xff]   ;;  %v3735_v51 = vld [vmem:[%s4009_s28 + $0x10] sm:$0xff]   ;;  %s2960_s20 = sshll.u32 %s3858_s18, 4  ;;  %s2961_s20 = int_to_ptr.vmem [resolvable:$true] %s2960_s20 }
 0x660   : > { %3419 = vmatpush3.bf16.msra.mxu1 %v3730_v29  ;;  %3384 = vmatpush3.bf16.msra.mxu0 %v3730_v29  ;;  %v3736_v50 = vld [vmem:[%s4009_s28 + $0x8] sm:$0xff]   ;;  %v3737_v25 = vld [vmem:[%s4009_s28] sm:$0xff]   ;;  %v3738_v22 = vld [vmem:[#allocation4 + $0x8] sm:$0xff]   ;;  %s3741_s25 = scalar_lea.vmem %s2961_s20, 128  ;;  %p3748_p5 = scmp.lt.s32.totalorder %s2961_s20, %s2961_s20 }
 0x661   : > { %3412 = vmatprep.subr.bf16.mxu1 %v3856_v35  ;;  %3385 = vmatprep.subr.bf16.mxu0 %v3856_v35  ;;  %v3739_v40 = vld [vmem:[#allocation4] sm:$0xff]   ;;  %p3742_p1 = scmp.ne.s32.totalorder %s2961_s20, %s3741_s25  ;;  %p3749_p7 = scmp.lt.s32.totalorder %s3741_s25, %s3741_s25 }
 0x662   : > { %3403 = vmatprep.mubr.msk.bf16.mxu1 %vm3857_vm0, %v3856_v35  ;;  %3399 = vmatprep.mubr.msk.bf16.mxu0 %vm3857_vm0, %v3856_v35 }
 0x663   : > { %p3743_p2 = pnand %p3742_p1, %p221_p3  ;;  %p3750_p10 = por %p3749_p7, %p3748_p5 }
 0x664   : > { %3420 = vmatpush3.bf16.msra.mxu1 %v3731_v33  ;;  %3386 = vmatpush3.bf16.msra.mxu0 %v3731_v33  ;;  %v3740_v26 = vld [vmem:[#allocation4 + $0x10] sm:$0xff]  }
 0x665   : > { %3413 = vmatprep.subr.bf16.mxu1 %v3856_v35  ;;  %3387 = vmatprep.subr.bf16.mxu0 %v3856_v35  ;;  %p3744_p4 = pneg %p3743_p2 }
 0x667   : > { %p3751_p11 = pnand %p3750_p10, %p3744_p4 }
 0x668   : > { %3421 = vmatpush3.bf16.msra.mxu1 %v3732_v39  ;;  %3388 = vmatpush3.bf16.msra.mxu0 %v3732_v39 }
 0x669   : > { %3414 = vmatprep.subr.bf16.mxu1 %v3856_v35  ;;  %3389 = vmatprep.subr.bf16.mxu0 %v3856_v35 }
 0x66c   : > { %3422 = vmatpush3.bf16.msra.mxu1 %v3733_v46  ;;  %3390 = vmatpush3.bf16.msra.mxu0 %v3733_v46 }
 0x66d   : > { %3415 = vmatprep.subr.bf16.mxu1 %v3856_v35  ;;  %3391 = vmatprep.subr.bf16.mxu0 %v3856_v35 }
 0x670   : > { %3423 = vmatpush3.bf16.msra.mxu1 %v3734_v49  ;;  %3392 = vmatpush3.bf16.msra.mxu0 %v3734_v49 }
 0x671   : > { %3416 = vmatprep.subr.bf16.mxu1 %v3856_v35  ;;  %3393 = vmatprep.subr.bf16.mxu0 %v3856_v35 }
 0x674   : > { %3424 = vmatpush3.bf16.msra.mxu1 %v3735_v51  ;;  %3394 = vmatpush3.bf16.msra.mxu0 %v3735_v51 }
 0x675   : > { %3417 = vmatprep.subr.bf16.mxu1 %v3856_v35  ;;  %3395 = vmatprep.subr.bf16.mxu0 %v3856_v35 }
 0x678   : > { %3425 = vmatpush3.bf16.msra.mxu1 %v3736_v50  ;;  %3396 = vmatpush3.bf16.msra.mxu0 %v3736_v50 }
 0x679   : > { %3418 = vmatprep.subr.bf16.mxu1 %v3856_v35  ;;  %3397 = vmatprep.subr.bf16.mxu0 %v3856_v35 }
 0x67c   : > { %3426 = vmatpush3.bf16.msra.mxu1 %v3737_v25  ;;  %3398 = vmatpush3.bf16.msra.mxu0 %v3737_v25 }
 0x67f   : > { %3404 = vmatmul.mubr.bf16.vlgmr.msra.gmra.mxu1 %v3738_v22  ;;  %3400 = vmatmul.mubr.bf16.vlgmr.msra.gmra.mxu0 %v3739_v40 }
 0x680   : > { %3407 = vmatprep.mubr.msk.bf16.mxu1 %vm3857_vm0, %v3856_v35 }
 0x687   : > { %3408 = vmatmul.mubr.bf16.gmra.mxu1 %v3740_v26 }
 0x688   : > { %3754 = shalt.err (!%p3751_p11)
}
 0x689   : > { %3430 = dma.vmem_to_hbm [thread:$0]  (%p221_p3), %s2961_s20, 128, %s4846_s9, [#allocation9]  }
 0x68a   : > { %s3859_s30 = smov [#allocation10]  }
 0x68b   : > { %s2971_s11 = sshll.u32 %s3859_s30, 4  ;;  %s2972_s11 = int_to_ptr.vmem [resolvable:$true] %s2971_s11 }
 0x68c   : > { %s3765_s6 = scalar_lea.vmem %s2972_s11, 128  ;;  %p3772_p1 = scmp.lt.s32.totalorder %s2972_s11, %s2972_s11 }
 0x68d   : > { %p3766_p12 = scmp.ne.s32.totalorder %s2972_s11, %s3765_s6  ;;  %p3773_p2 = scmp.lt.s32.totalorder %s3765_s6, %s3765_s6 }
 0x68f   : > { %p3767_p13 = pnand %p3766_p12, %p221_p3  ;;  %p3774_p5 = por %p3773_p2, %p3772_p1 }
 0x691   : > { %p3768_p0 = pneg %p3767_p13 }
 0x693   : > { %p3775_p4 = pnand %p3774_p5, %p3768_p0 }
 0x695   : > { %3778 = shalt.err (!%p3775_p4)
}
 0x696   : > { %3432 = dma.vmem_to_hbm [thread:$0]  (%p221_p3), %s2972_s11, 128, %s4847_s10, [#allocation9]  }
 0x697   : > { %s4886_s20 = scalar_lea.vmem %s4844_s7, %s4003_s21  ;;  %s3342_s21 = sshll.u32 %s3940_s17, 7 }
 0x698   : > { %v3330_v44 = vld [vmem:[%s4886_s20] ss:$0 sm:$0xff]  ;;  %s2946_s25 = sshll.u32 %s4011_s29, 4  ;;  %s4787_s30 = scalar_lea.hbm %s4845_s8, %s3342_s21  ;;  %s4789_s25 = int_to_ptr.vmem [resolvable:$true] %s2946_s25 }
 0x699   : > { %s2934_s11 = scalar_lea.sflag [#allocation7], %s3997_s12  ;;  %s3789_s6 = scalar_lea.vmem %s4789_s25, 768 }
 0x69a   : > { %p3790_p7 = scmp.ne.s32.totalorder %s4789_s25, %s3789_s6  ;;  %s3860_s22 = smov [#allocation6]  }
 0x69b   : > { %s3793_s15 = sshll.u32 %s3860_s22, 4  ;;  %s3794_s15 = int_to_ptr.vmem [resolvable:$false] %s3793_s15 }
 0x69c   : > { %p3791_p10 = pnand %p3790_p7, %p3960_p6  ;;  %s3795_s27 = scalar_lea.vmem %s3794_s15, 1536 }
 0x69d   : > { %p3796_p12 = scmp.lt.s32.totalorder %s4789_s25, %s3794_s15  ;;  %p3797_p13 = scmp.lt.s32.totalorder %s3795_s27, %s3789_s6 }
 0x69e   : > { %p3792_p11 = pneg %p3791_p10 }
 0x69f   : > { %p3798_p0 = por %p3797_p13, %p3796_p12 }
 0x6a1   : > { %p3799_p1 = pnand %p3798_p0, %p3792_p11 }
 0x73f   : > { %v2912_v30 = vpop.f32.mrf.mxu1  ;;  %v2904_v32 = vpop.f32.mrf.mxu0 }
 0x740   : > { %v2913_v34 = vadd.f32 %v3330_v44, %v2912_v30  ;;  %v2905_v36 = vadd.f32 %v3330_v44, %v2904_v32 }
 0x741   : > { %v3405_v7 = vpop.f32.mrf.mxu1  ;;  %v3401_v23 = vpop.f32.mrf.mxu0 }
 0x742   : > { %2929 = vst [vmem:[%s4011_s29 + $0x10] sm:$0xff] %v2913_v34  ;;  %2927 = vst [vmem:[%s4011_s29] sm:$0xff] %v2905_v36 }
 0x743   : > { %v2915_v41 = vpop.f32.mrf.mxu1  ;;  %v2907_v45 = vpop.f32.mrf.mxu0 }
 0x744   : > { %v2916_v27 = vadd.f32 %v3330_v44, %v2915_v41  ;;  %v2908_v42 = vadd.f32 %v3330_v44, %v2907_v45 }
 0x745   : > { %v3406_v47 = vpop.f32.mrf.mxu1  ;;  %v3402_v61 = vpop.f32.mrf.mxu0 }
 0x746   : > { %2930 = vst [vmem:[%s4011_s29 + $0x18] sm:$0xff] %v2916_v27  ;;  %2928 = vst [vmem:[%s4011_s29 + $0x8] sm:$0xff] %v2908_v42 }
 0x747   : > { %v2920_v52 = vpop.f32.mrf.mxu1 }
 0x748   : > { %v2921_v53 = vadd.f32 %v3330_v44, %v2920_v52 }
 0x749   : > { %v3409_v59 = vpop.f32.mrf.mxu1 }
 0x74a   : > { %2931 = vst [vmem:[%s4011_s29 + $0x20] sm:$0xff] %v2921_v53 }
 0x74b   : > { %v2923_v60 = vpop.f32.mrf.mxu1 }
 0x74c   : > { %v2924_v62 = vadd.f32 %v3330_v44, %v2923_v60 }
 0x74d   : > { %v3410_v63 = vpop.f32.mrf.mxu1 }
 0x74e   : > { %2932 = vst [vmem:[%s4011_s29 + $0x28] sm:$0xff] %v2924_v62 }
 0x74f   : > { %3802 = shalt.err (!%p3799_p1)
}
 0x750   : > { %s3803_s29 = scalar_lea.hbm %s4787_s30, 768  ;;  %s3807_s21 = scalar_lea.hbm %s4845_s8, 1536 }
 0x751   : > { %p3804_p2 = scmp.ne.s32.totalorder %s4787_s30, %s3803_s29  ;;  %p3808_p7 = scmp.lt.s32.totalorder %s4787_s30, %s4845_s8 }
 0x752   : > { %p3809_p10 = scmp.lt.s32.totalorder %s3807_s21, %s3803_s29 }
 0x753   : > { %p3805_p5 = pnand %p3804_p2, %p3960_p6 }
 0x754   : > { %p3810_p11 = por %p3809_p10, %p3808_p7 }
 0x755   : > { %p3806_p4 = pneg %p3805_p5 }
 0x757   : > { %p3811_p12 = pnand %p3810_p11, %p3806_p4 }
 0x759   : > { %3814 = shalt.err (!%p3811_p12)
}
 0x75a   : > { %s3861_s6 = smov 128   ;;  %s3862_s22 = smov 256  }
 0x75b   : > { %s3863_s15 = smov 8  }
 0x75c   : > { %3428 = dma.vmem_to_hbm [thread:$0]  (%p3960_p6), %s4789_s25, 768, %s4787_s30, %s2934_s11, %s3861_s6, %s3862_s22, %s3863_s15  }
 0x75d   : > { %3832 = dma.done.wait (%p221_p3), [#allocation9], 256  }
 0x75e   : > { %3834 = vsyncadd (%p221_p3), [#allocation9], 4294967040 }
 0x75f PF: > { %s2991_s27 = sand.u32 1, %s3841_s13   ;;  %p3439_p13 = pnand %p3073_p9, %p3964_p8 }
 0x760   : > { %s2992_s29 = scalar_lea.sflag [#allocation7], %s2991_s27 }
 0x761   : > { %p3440_p0 = pneg %p3439_p13 }
 0x763   : > { %3836 = dma.done.wait (%p3440_p0), %s2992_s29, 768  }
 0x764   : > { %3838 = vsyncadd (%p3440_p0), %s2992_s29, 4294966528  ;;  %s4887_s23 = sld [smem:[#allocation13_spill]]  ;;  %p22_p6 = scmp.ge.s32.totalorder %s3944_s19, 4  }
 0x765   : > { %s4888_s15 = sld [smem:[#allocation14_spill]]  ;;  %s4889_s13 = smov %s3845_s14 }
 0x766   : > { %s4891_s16 = smov %s3944_s19  ;;  %24 = sbr.rel (!%p22_p6) target bundleno = 6 (0x6), region = 167 }
 0x76a   : > { %s4890_s14 = smov %s4887_s23 }
 0x76b   :  { %2997 = vsyncpa [#allocation7], 1 }
 0x76c   :  { %2999 = vsyncpa [#allocation7 + $0x1], 1 }
 0x76d   :  { %3000 = vsyncpa [#allocation9], 1 }

</bundles_post_ra>
